<compile_context>
chip_gen: v5e
topology: v5e:2x2
jax: 0.10.0
libtpu: 0.0.40
codegen_flags: <defaults>
</compile_context>

<pallas_src>
import functools
import math

import jax
import jax.numpy as jnp
from jax import lax
from jax.experimental import pallas as pl
from jax.experimental.pallas import tpu as pltpu


def _cast(x, dtype):
    """Cast helper that skips no-op casts."""
    dtype = jnp.dtype(dtype)
    return x if x.dtype == dtype else x.astype(dtype)


def _round_up(x, m):
    return ((x + m - 1) // m) * m


def _pick_tile(total, want, align):
    """Largest divisor of `total` that is <= want and a multiple of `align`
    (falls back to `total`, which is always a legal full-dim block)."""
    if total <= want:
        return total
    t = (min(want, total) // align) * align
    while t >= align:
        if total % t == 0:
            return t
        t -= align
    return total


def _default_vmem_limit_bytes():
    """~3/4 of physical VMEM: ~96 MiB on v5e/v6e (128 MiB), ~48 MiB on v7x."""
    cap = None
    try:
        info = pltpu.get_tpu_info()
        cap = getattr(info, "vmem_capacity_bytes", None)
    except Exception:
        cap = None
    if not cap:
        cap = 64 * 1024 * 1024  # conservative (v7x-sized) fallback
    return min(int(cap) * 3 // 4, 100 * 1024 * 1024)


def _attn_vmem_estimate(D, n_heads, d_k, q_tile, kv_tile, cb, out_bytes):
    """Rough VMEM footprint of the attention pass (double-buffered blocks,
    scratches, and per-step intermediates) used to validate tile sizes."""
    f32 = 4
    dkp = _round_up(d_k, 128)              # lane padding of d_k-minor buffers
    kvp = _round_up(kv_tile, 128)
    est = 0
    est += 2 * q_tile * D * f32                       # raw K block (x2 buf)
    est += 2 * 2 * D * kv_tile * cb                   # qT, vT blocks (x2 buf)
    est += 2 * n_heads * D * dkp * cb                 # wk3
    est += 2 * n_heads * 8 * dkp * f32                # bk3
    est += 2 * n_heads * _round_up(d_k, 8) * D * cb   # wo3
    est += 2 * 8 * D * f32                            # bo
    est += 2 * q_tile * D * out_bytes                 # output block (x2 buf)
    est += 2 * n_heads * q_tile * 128 * f32           # m, l scratch (lane pad)
    est += n_heads * q_tile * dkp * (f32 + cb)        # acc + kq scratch
    est += n_heads * q_tile * kvp * (3 * f32 + cb)    # s / p / temporaries
    return est


def _proj_vmem_estimate(D, seq_tile, cb):
    f32 = 4
    est = 0
    est += 2 * 2 * seq_tile * D * f32                 # Q, V input blocks
    est += 2 * 2 * D * D * cb                         # two weights
    est += 2 * 2 * D * 128 * f32                      # two [D,1] biases
    est += 2 * 2 * D * seq_tile * cb                  # two transposed outputs
    est += 2 * D * seq_tile * f32                     # f32 matmul temporaries
    return est


# --------------------------- projection kernel ------------------------------

def qv_projT_kernel(q_ref, v_ref, wqT_ref, bq_ref, wvT_ref, bv_ref,
                    qT_ref, vT_ref, *, compute_dtype):
    """Project one [ts, D] tile of Q and V, storing the result *transposed*
    as a [D, ts] block of the [B, D, S] outputs.

    The "nt" dot_general (both operands contract their minor dim, exactly the
    flash-attention QK^T pattern) yields [D_out, ts] directly, so the store is
    one lane-dense full-block store: no per-head slices, no relayouts."""
    def projT(x_ref, wT_ref, b_ref, out_ref):
        x = _cast(x_ref[0], compute_dtype)                        # [ts, D]
        yT = lax.dot_general(wT_ref[...], x,
                             (((1,), (1,)), ((), ())),
                             preferred_element_type=jnp.float32)  # [D, ts]
        yT = yT + b_ref[...]                                      # [D,1] f32 bias
        out_ref[0] = _cast(yT, out_ref.dtype)

    projT(q_ref, wqT_ref, bq_ref, qT_ref)
    projT(v_ref, wvT_ref, bv_ref, vT_ref)


# ----------- flash attention + fused K projection + fused W_o ---------------

def flash_attn_out_kernel(kraw_ref, wk3_ref, bk3_ref, qT_ref, vT_ref,
                          wo3_ref, bo_ref, o_ref,
                          m_sc, l_sc, acc_sc, kq_sc,
                          *, n_heads, d_k, compute_dtype):
    j = pl.program_id(2)
    cdt = jnp.dtype(compute_dtype)
    low_precision_exp = cdt != jnp.dtype(jnp.float32)

    @pl.when(j == 0)
    def _():
        m_sc[...] = jnp.full(m_sc.shape, -jnp.inf, dtype=m_sc.dtype)
        l_sc[...] = jnp.zeros(l_sc.shape, dtype=l_sc.dtype)
        acc_sc[...] = jnp.zeros(acc_sc.shape, dtype=acc_sc.dtype)
        # Fused, pre-scaled K projection ('query' role): per-head matmuls with
        # the head-split weight, done once per (b, i) row tile (amortized over
        # the whole kv loop) -- no head-major intermediate in HBM.
        x = _cast(kraw_ref[0], compute_dtype)                     # [tq, D]
        for h in range(n_heads):
            yh = jnp.dot(x, wk3_ref[h],
                         preferred_element_type=jnp.float32)      # [tq, d_k]
            kq_sc[h] = _cast(yh + bk3_ref[h], kq_sc.dtype)

    tkv = qT_ref.shape[2]
    # Free major-dim splits (d_k is a multiple of 8): no lane relayouts.
    qk_T = qT_ref[0].reshape(n_heads, d_k, tkv)                   # [H,d_k,tkv]
    v_T = vT_ref[0].reshape(n_heads, d_k, tkv)                    # [H,d_k,tkv]

    # Head-batched scores s[h,i,j] = sum_d kq[h,i,d] * qk_T[h,d,j]   ("nn")
    s = jnp.einsum('hid,hdj->hij', kq_sc[...], qk_T,
                   preferred_element_type=jnp.float32)            # [H,tq,tkv]

    m_prev = m_sc[...]
    m_new = jnp.maximum(m_prev, s.max(axis=-1, keepdims=True))
    alpha = jnp.exp(m_prev - m_new)
    if low_precision_exp:
        # Inner loop is EUP-bound at small d_k on v6e/v7x: bf16 exp roughly
        # doubles throughput on the binding slot.  f32 stats / accumulation
        # are kept; the f32 validation path never takes this branch.
        p = jnp.exp(_cast(s - m_new, cdt))
        p_sum = jnp.sum(_cast(p, jnp.float32), axis=-1, keepdims=True)
    else:
        p = jnp.exp(s - m_new)
        p_sum = jnp.sum(p, axis=-1, keepdims=True)
    l_sc[...] = alpha * l_sc[...] + p_sum
    # acc[h,i,d] += sum_j p[h,i,j] * v_T[h,d,j]   ("nt", flash-style)
    acc_sc[...] = alpha * acc_sc[...] + jnp.einsum(
        'hij,hdj->hid', p, v_T, preferred_element_type=jnp.float32)
    m_sc[...] = m_new

    @pl.when(j == pl.num_programs(2) - 1)
    def _():
        inv_l = pl.reciprocal(l_sc[...], approx=True)             # [H, tq, 1]
        attn = acc_sc[...] * inv_l                                # [H,tq,d_k]
        # Fused W_o as per-head partial matmuls accumulated in f32: no
        # combine-heads relayout, then a single lane-dense [tq, D] store.
        out = bo_ref[...]                                         # [1, D] f32
        for h in range(n_heads):
            out = out + jnp.dot(_cast(attn[h], compute_dtype), wo3_ref[h],
                                preferred_element_type=jnp.float32)
        o_ref[0] = _cast(out, o_ref.dtype)


# --------------------------------- wrapper ----------------------------------

def multi_head_attention(K, Q, V, params, n_heads, *,
                         seq_tile=None, q_tile=None, kv_tile=None,
                         compute_dtype=jnp.bfloat16,
                         out_dtype=None,
                         vmem_limit_bytes=None):
    """K, Q, V: [B, S, D] float32.  Matches MultiHeadAttention.forward(K, Q, V).

    compute_dtype: dtype fed to the MXU/EUP (bf16 recommended); softmax stats
    and all accumulation stay in f32.
    out_dtype: output dtype (default: input dtype); pass bf16 to halve the
    output writeback if the consumer tolerates it.
    """
    # TODO(synk): optional attention `mask` argument (default None) is not
    # plumbed through the kernels; the module is exercised with mask=None.
    # (If added, guard m_new against fully-masked tiles to avoid inf-inf NaN.)
    wq, bq, wk, bk, wv, bv, wo, bo = params
    B, S, D = Q.shape
    assert D % n_heads == 0, "d_model must be divisible by n_heads"
    d_k = D // n_heads
    assert D % 128 == 0 and d_k % 8 == 0, (
        "kernel assumes lane-aligned d_model and sublane-aligned d_k")

    cdt = jnp.dtype(compute_dtype)
    cb = cdt.itemsize
    out_dtype = jnp.dtype(Q.dtype if out_dtype is None else out_dtype)
    if vmem_limit_bytes is None:
        vmem_limit_bytes = _default_vmem_limit_bytes()
    budget = int(vmem_limit_bytes * 0.8)

    # ---- tile selection (never default to S; validate against VMEM) -------
    seq_tile = _pick_tile(S, 512 if seq_tile is None else seq_tile, 128)
    q_tile = _pick_tile(S, 256 if q_tile is None else q_tile, 128)
    kv_tile = _pick_tile(S, 512 if kv_tile is None else kv_tile, 128)
    for _ in range(16):
        if _attn_vmem_estimate(D, n_heads, d_k, q_tile, kv_tile, cb,
                               out_dtype.itemsize) <= budget:
            break
        new_kv = _pick_tile(S, max(128, kv_tile // 2), 128)
        if new_kv < kv_tile:
            kv_tile = new_kv
            continue
        new_q = _pick_tile(S, max(128, q_tile // 2), 128)
        if new_q < q_tile:
            q_tile = new_q
            continue
        break
    for _ in range(16):
        if _proj_vmem_estimate(D, seq_tile, cb) <= budget:
            break
        new_s = _pick_tile(S, max(128, seq_tile // 2), 128)
        if new_s < seq_tile:
            seq_tile = new_s
        else:
            break
    assert S % seq_tile == 0 and S % q_tile == 0 and S % kv_tile == 0

    # ---- parameter relayout (wrapper-side, O(D^2), one-time per call) ------
    scale = 1.0 / math.sqrt(d_k)
    wqT = _cast(jnp.transpose(wq), cdt)                 # [D_out, D_in]
    wvT = _cast(jnp.transpose(wv), cdt)
    bq_col = jnp.reshape(bq, (D, 1)).astype(jnp.float32)
    bv_col = jnp.reshape(bv, (D, 1)).astype(jnp.float32)
    # K ('query' role) weights pre-scaled by 1/sqrt(d_k) and pre-split per head.
    wk3 = _cast(jnp.transpose(jnp.reshape(wk * scale, (D, n_heads, d_k)),
                              (1, 0, 2)), cdt)          # [H, D, d_k]
    bk3 = jnp.reshape(bk * scale, (n_heads, 1, d_k)).astype(jnp.float32)
    wo3 = _cast(jnp.reshape(wo, (n_heads, d_k, D)), cdt)  # [H, d_k, D]
    bo_row = jnp.reshape(bo, (1, D)).astype(jnp.float32)

    # ---- 1) Q/V projections -> transposed, lane-dense [B, D, S] ------------
    x_spec = pl.BlockSpec((1, seq_tile, D), lambda b, s: (b, s, 0))
    w_spec = pl.BlockSpec((D, D), lambda b, s: (0, 0))
    bcol_spec = pl.BlockSpec((D, 1), lambda b, s: (0, 0))
    t_spec = pl.BlockSpec((1, D, seq_tile), lambda b, s: (b, 0, s))

    projT_shape = jax.ShapeDtypeStruct((B, D, S), cdt)
    proj_flops = 2 * 2 * B * S * D * D
    proj_bytes = (2 * B * S * D * Q.dtype.itemsize       # activation reads
                  + 2 * (D * D * cb + D * 4)             # weights + biases
                  + 2 * B * S * D * cb)                  # transposed writes

    qT, vT = pl.pallas_call(
        functools.partial(qv_projT_kernel, compute_dtype=cdt),
        out_shape=(projT_shape, projT_shape),
        grid=(B, S // seq_tile),
        in_specs=[x_spec, x_spec, w_spec, bcol_spec, w_spec, bcol_spec],
        out_specs=(t_spec, t_spec),
        compiler_params=pltpu.CompilerParams(
            dimension_semantics=("parallel", "parallel"),
            vmem_limit_bytes=vmem_limit_bytes),
        cost_estimate=pl.CostEstimate(flops=proj_flops, transcendentals=0,
                                      bytes_accessed=proj_bytes),
    )(Q, V, wqT, bq_col, wvT, bv_col)

    # ---- 2) Flash attention (online softmax) + fused K proj + fused W_o ----
    nq, nkv = S // q_tile, S // kv_tile
    kraw_spec = pl.BlockSpec((1, q_tile, D), lambda b, i, j: (b, i, 0))
    wk3_spec = pl.BlockSpec((n_heads, D, d_k), lambda b, i, j: (0, 0, 0))
    bk3_spec = pl.BlockSpec((n_heads, 1, d_k), lambda b, i, j: (0, 0, 0))
    kvT_spec = pl.BlockSpec((1, D, kv_tile), lambda b, i, j: (b, 0, j))
    wo3_spec = pl.BlockSpec((n_heads, d_k, D), lambda b, i, j: (0, 0, 0))
    bo_spec = pl.BlockSpec((1, D), lambda b, i, j: (0, 0))
    o_spec = pl.BlockSpec((1, q_tile, D), lambda b, i, j: (b, i, 0))

    attn_flops = B * (4 * S * S * D + 4 * S * D * D)
    attn_trans = B * n_heads * S * S
    attn_bytes = (B * S * D * 4                          # raw K (once per row tile)
                  + 2 * nq * B * S * D * cb              # Q_projT / V_projT streams
                  + B * S * D * out_dtype.itemsize       # output write
                  + 2 * n_heads * D * d_k * cb + 2 * D * 4)

    # NOTE: wk3/wo3/bk3/bo have constant index maps; when scaling d_model
    # toward the v7x 64 MiB VMEM ceiling, single-buffer them
    # (pipeline_mode=pl.Buffered(1)) or tile W_o's D_out axis.
    out = pl.pallas_call(
        functools.partial(flash_attn_out_kernel, n_heads=n_heads, d_k=d_k,
                          compute_dtype=cdt),
        out_shape=jax.ShapeDtypeStruct((B, S, D), out_dtype),
        grid=(B, nq, nkv),
        in_specs=[kraw_spec, wk3_spec, bk3_spec, kvT_spec, kvT_spec,
                  wo3_spec, bo_spec],
        out_specs=o_spec,
        scratch_shapes=[pltpu.VMEM((n_heads, q_tile, 1), jnp.float32),    # m
                        pltpu.VMEM((n_heads, q_tile, 1), jnp.float32),    # l
                        pltpu.VMEM((n_heads, q_tile, d_k), jnp.float32),  # acc
                        pltpu.VMEM((n_heads, q_tile, d_k), cdt)],         # kq
        compiler_params=pltpu.CompilerParams(
            dimension_semantics=("parallel", "parallel", "arbitrary"),
            vmem_limit_bytes=vmem_limit_bytes),
        cost_estimate=pl.CostEstimate(flops=attn_flops,
                                      transcendentals=attn_trans,
                                      bytes_accessed=attn_bytes),
    )(K, wk3, bk3, qT, vT, wo3, bo_row)
    return out


# ----------------------------- parameter init -------------------------------

def xavier_uniform_linear(key, d_model):
    """Matches nn.init.xavier_uniform_ on a (d_model, d_model) nn.Linear weight,
    bias = 0.  Weight returned in [D_in, D_out] layout (x @ W) + bias [1, D]."""
    bound = math.sqrt(6.0 / (d_model + d_model))
    w_torch = jax.random.uniform(key, (d_model, d_model),
                                 minval=-bound, maxval=bound, dtype=jnp.float32)
    w = w_torch.T
    b = jnp.zeros((1, d_model), dtype=jnp.float32)
    return w, b


# ------------------------------ pure-JAX ref ---------------------------------

def mha_reference(K_in, Q_in, V_in, params, n_heads):
    wq, bq, wk, bk, wv, bv, wo, bo = params
    B, S, D = Q_in.shape
    d_k = D // n_heads

    def lin(x, w, b):
        return x @ w + b[0]

    q = lin(Q_in, wq, bq).reshape(B, S, n_heads, d_k).transpose(0, 2, 1, 3)
    k = lin(K_in, wk, bk).reshape(B, S, n_heads, d_k).transpose(0, 2, 1, 3)
    v = lin(V_in, wv, bv).reshape(B, S, n_heads, d_k).transpose(0, 2, 1, 3)
    # swapped Q/K roles, exactly as the torch module does
    scores = jnp.einsum('bhid,bhjd->bhij', k, q) / math.sqrt(d_k)
    probs = jax.nn.softmax(scores, axis=-1)
    attn = jnp.einsum('bhij,bhjd->bhid', probs, v)
    attn = attn.transpose(0, 2, 1, 3).reshape(B, S, D)
    return lin(attn, wo, bo)


if __name__ == "__main__":
    # Small, lane/sublane-aligned shapes (D % 128 == 0, d_k % 8 == 0), with
    # multiple row/col tiles in the f32 run so the online softmax and the
    # parallel grid axes are actually exercised.
    B, S, D, H = 2, 256, 256, 4

    key = jax.random.PRNGKey(0)
    k_wq, k_wk, k_wv, k_wo, k_K, k_Q, k_V = jax.random.split(key, 7)

    wq, bq = xavier_uniform_linear(k_wq, D)
    wk, bk = xavier_uniform_linear(k_wk, D)
    wv, bv = xavier_uniform_linear(k_wv, D)
    wo, bo = xavier_uniform_linear(k_wo, D)
    params = (wq, bq, wk, bk, wv, bv, wo, bo)

    # forward(K, Q, V)
    K_in = jax.random.normal(k_K, (B, S, D), dtype=jnp.float32)
    Q_in = jax.random.normal(k_Q, (B, S, D), dtype=jnp.float32)
    V_in = jax.random.normal(k_V, (B, S, D), dtype=jnp.float32)

    ref = mha_reference(K_in, Q_in, V_in, params, H)

    # f32 path with explicit small tiles (exercises the multi-tile online
    # softmax + both parallel grid axes); tight tolerance.
    out_f32 = multi_head_attention(K_in, Q_in, V_in, params, H,
                                   seq_tile=128, q_tile=128, kv_tile=128,
                                   compute_dtype=jnp.float32)
    out_f32 = jax.block_until_ready(out_f32)
    assert out_f32.shape == (B, S, D)
    assert jnp.allclose(out_f32, ref, rtol=3e-3, atol=3e-3), "f32 mismatch"

    # bf16-fed MXU/EUP path with auto-selected tiles and per-generation VMEM
    # limit (the optimized configuration; bf16 rounding tolerance).
    out_bf16 = multi_head_attention(K_in, Q_in, V_in, params, H,
                                    compute_dtype=jnp.bfloat16)
    out_bf16 = jax.block_until_ready(out_bf16)
    assert out_bf16.shape == (B, S, D)
    assert jnp.allclose(out_bf16, ref, rtol=8e-2, atol=8e-2), "bf16 mismatch"

    print("KERNEL_OK")
</pallas_src>

<mosaic_0001>
module attributes {stable_mosaic.version = 11 : i64} {
  func.func @qv_projT_kernel(%arg0: i32, %arg1: i32, %arg2: memref<1x128x256xf32, #tpu.memory_space<vmem>>, %arg3: memref<1x128x256xf32, #tpu.memory_space<vmem>>, %arg4: memref<256x256xf32, #tpu.memory_space<vmem>>, %arg5: memref<256x1xf32, #tpu.memory_space<vmem>>, %arg6: memref<256x256xf32, #tpu.memory_space<vmem>>, %arg7: memref<256x1xf32, #tpu.memory_space<vmem>>, %arg8: memref<1x256x128xf32, #tpu.memory_space<vmem>>, %arg9: memref<1x256x128xf32, #tpu.memory_space<vmem>>) attributes {dimension_semantics = [#tpu.dimension_semantics<parallel>, #tpu.dimension_semantics<parallel>], iteration_bounds = array<i64: 2, 2>, scalar_prefetch = 0 : i64, scratch_operands = 0 : i64, tpu.core_type = #tpu.core_type<tc>, window_params = [{transform_indices = @transform_0, window_bounds = array<i64: 1, 128, 256>}, {transform_indices = @transform_1, window_bounds = array<i64: 1, 128, 256>}, {pipeline_mode = #tpu.pipeline_mode<synchronous>, transform_indices = @transform_2, window_bounds = array<i64: 256, 256>}, {pipeline_mode = #tpu.pipeline_mode<synchronous>, transform_indices = @transform_3, window_bounds = array<i64: 256, 1>}, {pipeline_mode = #tpu.pipeline_mode<synchronous>, transform_indices = @transform_4, window_bounds = array<i64: 256, 256>}, {pipeline_mode = #tpu.pipeline_mode<synchronous>, transform_indices = @transform_5, window_bounds = array<i64: 256, 1>}, {transform_indices = @transform_6, window_bounds = array<i64: 1, 256, 128>}, {transform_indices = @transform_7, window_bounds = array<i64: 1, 256, 128>}]} {
    %c0 = arith.constant 0 : index
    %c0_0 = arith.constant 0 : index
    %c0_1 = arith.constant 0 : index
    %0 = vector.load %arg2[%c0, %c0_0, %c0_1] : memref<1x128x256xf32, #tpu.memory_space<vmem>>, vector<1x128x256xf32>
    %1 = vector.shape_cast %0 : vector<1x128x256xf32> to vector<128x256xf32>
    %c0_2 = arith.constant 0 : index
    %c0_3 = arith.constant 0 : index
    %2 = vector.load %arg4[%c0_2, %c0_3] : memref<256x256xf32, #tpu.memory_space<vmem>>, vector<256x256xf32>
    %cst = arith.constant dense<0.000000e+00> : vector<256x128xf32>
    %3 = tpu.matmul %2, %1, %cst {dimension_numbers = #tpu.dot_dimension_numbers<[1], [1], [0], [0], [0, 0, 1, 0], [], []>} : vector<256x256xf32>, vector<128x256xf32>, vector<256x128xf32> -> vector<256x128xf32>
    %c0_4 = arith.constant 0 : index
    %c0_5 = arith.constant 0 : index
    %4 = vector.load %arg5[%c0_4, %c0_5] : memref<256x1xf32, #tpu.memory_space<vmem>>, vector<256x1xf32>
    %5 = vector.broadcast %4 : vector<256x1xf32> to vector<256x128xf32>
    %6 = arith.addf %3, %5 : vector<256x128xf32>
    %c0_6 = arith.constant 0 : index
    %c0_7 = arith.constant 0 : index
    %c0_8 = arith.constant 0 : index
    %7 = vector.load %arg8[%c0_6, %c0_7, %c0_8] : memref<1x256x128xf32, #tpu.memory_space<vmem>>, vector<1x256x128xf32>
    %8 = vector.shape_cast %7 : vector<1x256x128xf32> to vector<256x128xf32>
    %9 = vector.shape_cast %6 : vector<256x128xf32> to vector<1x256x128xf32>
    tpu.vector_store %arg8[%c0_6, %c0_7, %c0_8], %9 {strides = array<i32>} : memref<1x256x128xf32, #tpu.memory_space<vmem>>, vector<1x256x128xf32>,
    %c0_9 = arith.constant 0 : index
    %c0_10 = arith.constant 0 : index
    %c0_11 = arith.constant 0 : index
    %10 = vector.load %arg3[%c0_9, %c0_10, %c0_11] : memref<1x128x256xf32, #tpu.memory_space<vmem>>, vector<1x128x256xf32>
    %11 = vector.shape_cast %10 : vector<1x128x256xf32> to vector<128x256xf32>
    %c0_12 = arith.constant 0 : index
    %c0_13 = arith.constant 0 : index
    %12 = vector.load %arg6[%c0_12, %c0_13] : memref<256x256xf32, #tpu.memory_space<vmem>>, vector<256x256xf32>
    %cst_14 = arith.constant dense<0.000000e+00> : vector<256x128xf32>
    %13 = tpu.matmul %12, %11, %cst_14 {dimension_numbers = #tpu.dot_dimension_numbers<[1], [1], [0], [0], [0, 0, 1, 0], [], []>} : vector<256x256xf32>, vector<128x256xf32>, vector<256x128xf32> -> vector<256x128xf32>
    %c0_15 = arith.constant 0 : index
    %c0_16 = arith.constant 0 : index
    %14 = vector.load %arg7[%c0_15, %c0_16] : memref<256x1xf32, #tpu.memory_space<vmem>>, vector<256x1xf32>
    %15 = vector.broadcast %14 : vector<256x1xf32> to vector<256x128xf32>
    %16 = arith.addf %13, %15 : vector<256x128xf32>
    %c0_17 = arith.constant 0 : index
    %c0_18 = arith.constant 0 : index
    %c0_19 = arith.constant 0 : index
    %17 = vector.load %arg9[%c0_17, %c0_18, %c0_19] : memref<1x256x128xf32, #tpu.memory_space<vmem>>, vector<1x256x128xf32>
    %18 = vector.shape_cast %17 : vector<1x256x128xf32> to vector<256x128xf32>
    %19 = vector.shape_cast %16 : vector<256x128xf32> to vector<1x256x128xf32>
    tpu.vector_store %arg9[%c0_17, %c0_18, %c0_19], %19 {strides = array<i32>} : memref<1x256x128xf32, #tpu.memory_space<vmem>>, vector<1x256x128xf32>,
    return
  }
  func.func @transform_0(%arg0: i32, %arg1: i32) -> (i32, i32, i32) {
    %c0_i32 = arith.constant 0 : i32
    %c0_i32_0 = arith.constant 0 : i32
    return %arg0, %arg1, %c0_i32 : i32, i32, i32
  }
  func.func @transform_1(%arg0: i32, %arg1: i32) -> (i32, i32, i32) {
    %c0_i32 = arith.constant 0 : i32
    %c0_i32_0 = arith.constant 0 : i32
    return %arg0, %arg1, %c0_i32 : i32, i32, i32
  }
  func.func @transform_2(%arg0: i32, %arg1: i32) -> (i32, i32) {
    %c0_i32 = arith.constant 0 : i32
    %c0_i32_0 = arith.constant 0 : i32
    %c0_i32_1 = arith.constant 0 : i32
    return %c0_i32, %c0_i32_0 : i32, i32
  }
  func.func @transform_3(%arg0: i32, %arg1: i32) -> (i32, i32) {
    %c0_i32 = arith.constant 0 : i32
    %c0_i32_0 = arith.constant 0 : i32
    %c0_i32_1 = arith.constant 0 : i32
    return %c0_i32, %c0_i32_0 : i32, i32
  }
  func.func @transform_4(%arg0: i32, %arg1: i32) -> (i32, i32) {
    %c0_i32 = arith.constant 0 : i32
    %c0_i32_0 = arith.constant 0 : i32
    %c0_i32_1 = arith.constant 0 : i32
    return %c0_i32, %c0_i32_0 : i32, i32
  }
  func.func @transform_5(%arg0: i32, %arg1: i32) -> (i32, i32) {
    %c0_i32 = arith.constant 0 : i32
    %c0_i32_0 = arith.constant 0 : i32
    %c0_i32_1 = arith.constant 0 : i32
    return %c0_i32, %c0_i32_0 : i32, i32
  }
  func.func @transform_6(%arg0: i32, %arg1: i32) -> (i32, i32, i32) {
    %c0_i32 = arith.constant 0 : i32
    %c0_i32_0 = arith.constant 0 : i32
    return %arg0, %c0_i32, %arg1 : i32, i32, i32
  }
  func.func @transform_7(%arg0: i32, %arg1: i32) -> (i32, i32, i32) {
    %c0_i32 = arith.constant 0 : i32
    %c0_i32_0 = arith.constant 0 : i32
    return %arg0, %c0_i32, %arg1 : i32, i32, i32
  }
}

</mosaic_0001>

<bundles_post_ra>
// kernel: tpu_custom_call.1
= control target key start
LH: loop header
LB: loop body
LE: loop exit
PB: predicated region body
PF: predicated region fallthrough
CT: control target
= control target key end

     0   :  { %s2942_s0 = inlined_call_operand.hbm [shape: f32[2,256,256], index: 0, kind: input, shape index: {}]   ;;  %s2943_s1 = inlined_call_operand.hbm [shape: f32[2,256,256], index: 1, kind: input, shape index: {}]   ;;  %s2944_s2 = inlined_call_operand.vmem [shape: f32[256,256], index: 2, kind: input, shape index: {}]   ;;  %s2945_s3 = inlined_call_operand.vmem [shape: f32[256,1], index: 3, kind: input, shape index: {}]   ;;  %s2946_s4 = inlined_call_operand.hbm [shape: f32[256,256], index: 4, kind: input, shape index: {}]   ;;  %s2947_s5 = inlined_call_operand.vmem [shape: f32[256,1], index: 5, kind: input, shape index: {}]   ;;  %s2948_s6 = inlined_call_operand.hbm [shape: f32[2,256,256], index: 6, kind: output, shape index: {0}]   ;;  %s2949_s7 = inlined_call_operand.hbm [shape: f32[2,256,256], index: 7, kind: output, shape index: {1}]  }
   0x1   :  { %2964 = sst [smem:[#allocation24_spill]] %s2946_s4 }
   0x2   :  { %2965 = sst [smem:[#allocation25_spill]] %s2948_s6 }
   0x3   :  { %2966 = sst [smem:[#allocation26_spill]] %s2949_s7 }
   0x4   :  { %13 = vsyncpa [#allocation3], 0 }
   0x5   :  { %15 = vsyncpa [#allocation3 + $0x1], 0 }
   0x6   :  { %16 = vsyncpa [#allocation6], 0 }
   0x7   :  { %18 = vsyncpa [#allocation6 + $0x1], 0 }
   0x8   :  { %19 = vsyncpa [#allocation4], 0 }
   0x9   :  { %21 = vsyncpa [#allocation4 + $0x1], 0 }
   0xa   :  { %22 = vsyncpa [#allocation10], 0 }
   0xb   :  { %24 = vsyncpa [#allocation10 + $0x1], 0  ;;  %s2103_s24 = smov 0   ;;  %s2105_s25 = smov 0  }
   0xc   :  { %s2107_s26 = smov 0   ;;  %s2109_s27 = smov 0  }
   0xd   :  { %s2111_s28 = smov 0   ;;  %s2113_s29 = smov 0  }
   0xe   :  { %s2115_s30 = smov 0   ;;  %s2117_s8 = smov 0  }
   0xf LB: > { %2967 = sst [smem:[#allocation16_spill]] %s2026_s24  ;;  %s2144_s9 = sadd.s32 4294967295, %s2054_s8   ;;  %s2054_s8 = sphi %s2117_s8, %s30_s8   ;;  %s2050_s30 = sphi %s2115_s30, %s2994_s30   ;;  %s2046_s29 = sphi %s2113_s29, %s2993_s29   ;;  %s2042_s28 = sphi %s2111_s28, %s2992_s28   ;;  %s2038_s27 = sphi %s2109_s27, %s2991_s27   ;;  %s2034_s26 = sphi %s2107_s26, %s2997_s26   ;;  %s2030_s25 = sphi %s2105_s25, %s2996_s25   ;;  %s2026_s24 = sphi %s2103_s24, %s2995_s24  }
  0x10   : > { %2968 = sst [smem:[#allocation17_spill]] %s2046_s29  ;;  %s1688_s10 = sadd.s32 4294967294, %s2054_s8  }
  0x11   : > { %2969 = sst [smem:[#allocation18_spill]] %s2050_s30  ;;  %p64_p0 = scmp.ne.s32.totalorder %s2030_s25, %s2026_s24 }
  0x12   : > { %p65_p1 = scmp.eq.s32.totalorder %s2144_s9, 0  ;;  %p202_p2 = scmp.eq.s32.totalorder %s2144_s9, 3 }
  0x13   : > { %p208_p3 = scmp.eq.s32.totalorder %s1688_s10, 3  ;;  %p1689_p5 = scmp.ge.s32.totalorder %s2054_s8, 1 }
  0x14   : > { %p2153_p4 = por %p65_p1, %p64_p0  ;;  %p243_p7 = scmp.lt.s32.totalorder %s2054_s8, 5 }
  0x15   : > { %p2158_p6 = por %p208_p3, %p64_p0  ;;  %s2973_s4 = sld [smem:[#allocation24_spill]] }
  0x16   : > { %p2166_p8 = pnand %p1689_p5, %p243_p7  ;;  %s2056_s17 = smov [#allocation7]  }
  0x17   : > { %s2971_s12 = scalar_select %p2158_p6, 1, 0 }
  0x18   : > { %p1730_p9 = pneg %p2166_p8  ;;  %s262_s18 = sshll.u32 %s2056_s17, 4  ;;  %s263_s18 = int_to_ptr.vmem [resolvable:$true] %s262_s18 }
  0x19   : > { %2972 = sst [smem:[#allocation19_spill]] %s2971_s12  ;;  %s2950_s19 = smov 256  }
  0x1a   : > { %p1731_p10 = pnand %p1730_p9, %p65_p1  ;;  %s2952_s20 = smov 16  }
  0x1b   : > { %s260_s15 = sshll.u32 %s2973_s4, 4  ;;  %s39_s21 = sadd.s32 1, %s2046_s29  ;;  %s261_s15 = int_to_ptr.hbm [resolvable:$true] %s260_s15 }
  0x1c   : > { %1733 = dma.hbm_to_vmem [thread:$0]  (!%p1731_p10), %s261_s15, 8192, %s263_s18, [#allocation6], %s2950_s19, %s2950_s19, %s2952_s20  }
  0x1d   : > { %p40_p11 = scmp.ge.s32.totalorder %s39_s21, 2  ;;  %s42_s22 = sadd.s32 1, %s2050_s30 }
  0x1e   : > { %s51_s23 = sadd.s32 1, %s2034_s26  ;;  %p58_p12 = scmp.ne.s32.totalorder %s2034_s26, %s2030_s25 }
  0x1f   : > { %s2999_s21 = smov (%p40_p11, %s39_s21), 0  ;;  %s3001_s22 = smov (!%p40_p11, %s42_s22), %s2050_s30 }
  0x20   : > { %2975 = sst [smem:[#allocation20_spill]] %s2999_s21  ;;  %s47_s10 = ssub.s32 %s2046_s29, %s2999_s21 }
  0x21   : > { %p59_p13 = scmp.eq.s32.totalorder %s2054_s8, 0  ;;  %p44_p0 = scmp.ge.s32.totalorder %s3001_s22, 2 }
  0x22   : > { %p2190_p3 = por %p202_p2, %p58_p12  ;;  %p1749_p7 = scmp.lt.s32.totalorder %s2054_s8, 4 }
  0x23   : > { %p2194_p5 = por %p59_p13, %p58_p12  ;;  %s3003_s22 = smov (%p44_p0, %s3001_s22), 0 }
  0x24   : > { %s2976_s13 = scalar_select %p2190_p3, 1, 0 }
  0x25   : > { %2979 = sst [smem:[#allocation22_spill]] %s3003_s22  ;;  %s279_s15 = sand.u32 1, %s2034_s26  }
  0x26   : > { %2977 = sst [smem:[#allocation21_spill]] %s2976_s13  ;;  %s1716_s17 = sshll.u32 %s2046_s29, 5 }
  0x27   : > { %s46_s18 = ssub.s32 %s2050_s30, %s3003_s22  ;;  %s1692_s20 = sshll.u32 %s279_s15, 8 }
  0x28   : > { %s48_s19 = sor.u32 %s47_s10, %s46_s18  ;;  %s1695_s4 = sshll.u32 %s2050_s30, 6 }
  0x29   : > { %p49_p9 = scmp.eq.s32.totalorder %s48_s19, 0  ;;  %s283_s21 = scalar_lea.vmem [#allocation2], %s1692_s20 }
  0x2a   : > { %s294_s12 = sshll.u32 %s283_s21, 4  ;;  %s289_s13 = sadd.s32 %s1716_s17, %s1695_s4  ;;  %s295_s12 = int_to_ptr.vmem [resolvable:$true] %s294_s12 }
  0x2b   : > { %s2207_s24 = scalar_select %p49_p9, %s2034_s26, %s51_s23  }
  0x2c   : > { %s1696_s7 = sshll.u32 %s289_s13, 3  ;;  %p2213_p2 = pnand %p1749_p7, %p2194_p5 }
  0x2d   : > { %2980 = sst [smem:[#allocation23_spill]] %s2207_s24  ;;  %s291_s19 = scalar_lea.hbm %s2942_s0, %s1696_s7 }
  0x2e   : > { %s292_s10 = sshll.u32 %s291_s19, 4  ;;  %s316_s4 = scalar_lea.hbm %s2943_s1, %s1696_s7  ;;  %s293_s10 = int_to_ptr.hbm [resolvable:$true] %s292_s10 }
  0x2f   : > { %s280_s17 = scalar_lea.sflag [#allocation3], %s279_s15  ;;  %s2982_s13 = smov 16  }
  0x30   : > { %s2983_s14 = smov 256   ;;  %s317_s18 = sshll.u32 %s316_s4, 4  ;;  %s318_s18 = int_to_ptr.hbm [resolvable:$true] %s317_s18 }
  0x31   : > { %1737 = dma.hbm_to_vmem [thread:$0]  (!%p2213_p2), %s293_s10, 4096, %s295_s12, %s280_s17, %s2983_s14, %s2983_s14, %s2982_s13  }
  0x32   : > { %s308_s30 = scalar_lea.vmem [#allocation5], %s1692_s20  ;;  %s304_s29 = sand.u32 1, %s2054_s8  }
  0x33   : > { %s319_s24 = sshll.u32 %s308_s30, 4  ;;  %s305_s22 = scalar_lea.sflag [#allocation6], %s304_s29  ;;  %s320_s24 = int_to_ptr.vmem [resolvable:$true] %s319_s24 }
  0x34   : > { %1740 = dma.hbm_to_vmem [thread:$0]  (!%p2213_p2), %s318_s18, 4096, %s320_s24, %s305_s22, %s2983_s14, %s2983_s14, %s2982_s13  }
  0x35   : > { %331 = sbr.rel (%p2166_p8) target bundleno = 526 (0x20e), region = 44  ;;  %s2237_s7 = sand.u32 (!%p2166_p8), 1, %s2030_s25  }
  0x36   : > { %s2240_s12 = sshll.u32 (!%p2166_p8), %s2237_s7, 8  ;;  %s334_s30 = scalar_lea.sflag (!%p2166_p8), [#allocation3], %s2237_s7 }
  0x37   : > { %s2244_s20 = scalar_lea.vmem (!%p2166_p8), [#allocation2], %s2240_s12 }
  0x3a   : > { %2005 = dma.done.wait (%p2153_p4), %s334_s30, 4096  }
  0x3b   : > { %2007 = vsyncadd (%p2153_p4), %s334_s30, 4294963200  ;;  %s343_s6 = sand.u32 1, %s2144_s9   ;;  %s2252_s16 = scalar_lea.vmem [#allocation5], %s2240_s12 }
  0x3c   : > { %s344_s24 = scalar_lea.sflag [#allocation6], %s343_s6 }
  0x3d   : > { %2009 = dma.done.wait (%p2153_p4), %s344_s24, 4096  }
  0x3e   : > { %2011 = vsyncadd (%p2153_p4), %s344_s24, 4294963200 }
  0x3f   : > { %2013 = dma.done.wait (%p65_p1), [#allocation6], 8192  }
  0x40   : > { %2015 = vsyncadd (%p65_p1), [#allocation6], 4294959104  ;;  %v2059_v0 = vmov 0   ;;  %v972_v1 = vld [vmem:[%s2252_s16 + $0xf0] sm:$0xff]  ;;  %v492_v2 = vld [vmem:[%s2945_s3] sm:$0xff]  ;;  %s2682_s14 = scalar_lea.vmem [#allocation8], %s2240_s12 }
  0x41   : > { %1823 = vset.pattern.permute.xlu0 %v2059_v0  ;;  %1824 = vset.pattern.permute.xlu1 %v2059_v0  ;;  %v426_v3 = vld [vmem:[%s2244_s20 + $0xf0] sm:$0xff]  ;;  %v427_v4 = vld [vmem:[%s2244_s20 + $0xf8] sm:$0xff]  ;;  %v970_v6 = vld [vmem:[%s2252_s16 + $0xe0] sm:$0xff]  ;;  %s2697_s6 = scalar_lea.vmem [#allocation9], %s2240_s12  ;;  %s1710_s11 = sshll.u32 %s2042_s28, 6 }
  0x42   : > { %1825 = vset.pattern.permute.xlu2 %v2059_v0  ;;  %1230 = vmatpush.xpose.msra.mxu2 %v972_v1  ;;  %v973_v5 = vld [vmem:[%s2252_s16 + $0xf8] sm:$0xff]  ;;  %v424_v7 = vld [vmem:[%s2244_s20 + $0xe0] sm:$0xff]  ;;  %v425_v8 = vld [vmem:[%s2244_s20 + $0xe8] sm:$0xff]  ;;  %s2984_s28 = sld [smem:[#allocation25_spill]]  ;;  %s1525_s29 = sshll.u32 %s2697_s6, 4  ;;  %s1526_s29 = int_to_ptr.vmem [resolvable:$true] %s1525_s29 }
  0x43   : > { %526 = vperm.xlu0 %1823, %v492_v2   ;;  %684 = vmatpush.xpose.msra.mxu0 %v426_v3  ;;  %v494_v9 = vld [vmem:[%s2945_s3 + $0x10] sm:$0xff]  ;;  %v971_v10 = vld [vmem:[%s2252_s16 + $0xe8] sm:$0xff]  ;;  %v423_v14 = vld [vmem:[%s2244_s20 + $0xd8] sm:$0xff]  ;;  %s2986_s17 = sld [smem:[#allocation26_spill]]  ;;  %s1489_s30 = scalar_lea.sflag [#allocation4], %s2237_s7 }
  0x44   : > { %797 = vmatpush.xpose.msra.mxu1 %v427_v4  ;;  %1343 = vmatpush.xpose.msra.mxu3 %v973_v5  ;;  %v968_v11 = vld [vmem:[%s2252_s16 + $0xd0] sm:$0xff]  ;;  %v493_v12 = vld [vmem:[%s2945_s3 + $0x8] sm:$0xff]  ;;  %v969_v15 = vld [vmem:[%s2252_s16 + $0xd8] sm:$0xff] }
  0x45   : > { %536 = vperm.xlu1 %1824, %v494_v9   ;;  %v422_v13 = vld [vmem:[%s2244_s20 + $0xd0] sm:$0xff]  ;;  %v495_v16 = vld [vmem:[%s2945_s3 + $0x18] sm:$0xff]  ;;  %v966_v17 = vld [vmem:[%s2252_s16 + $0xc0] sm:$0xff] }
  0x46   : > { %1231 = vmatpush.xpose.msra.mxu2 %v970_v6  ;;  %v496_v18 = vld [vmem:[%s2945_s3 + $0x20] sm:$0xff]  ;;  %v421_v20 = vld [vmem:[%s2244_s20 + $0xc8] sm:$0xff]  ;;  %v964_v22 = vld [vmem:[%s2252_s16 + $0xb0] sm:$0xff] }
  0x47   : > { %685 = vmatpush.xpose.msra.mxu0 %v424_v7  ;;  %v420_v19 = vld [vmem:[%s2244_s20 + $0xc0] sm:$0xff]  ;;  %546 = vperm.xlu2 %1825, %v496_v18   ;;  %v967_v21 = vld [vmem:[%s2252_s16 + $0xc8] sm:$0xff]  ;;  %v498_v23 = vld [vmem:[%s2945_s3 + $0x30] sm:$0xff] }
  0x48   : > { %798 = vmatpush.xpose.msra.mxu1 %v425_v8  ;;  %1344 = vmatpush.xpose.msra.mxu3 %v971_v10  ;;  %v418_v24 = vld [vmem:[%s2244_s20 + $0xb0] sm:$0xff]  ;;  %v419_v25 = vld [vmem:[%s2244_s20 + $0xb8] sm:$0xff]  ;;  %v497_v27 = vld [vmem:[%s2945_s3 + $0x28] sm:$0xff]  ;;  %s2985_s19 = smov %s2984_s28 }
  0x49   : > { %v965_v26 = vld [vmem:[%s2252_s16 + $0xb8] sm:$0xff]  ;;  %v962_v29 = vld [vmem:[%s2252_s16 + $0xa0] sm:$0xff]  ;;  %v417_v31 = vld [vmem:[%s2244_s20 + $0xa8] sm:$0xff] }
  0x4a   : > { %1232 = vmatpush.xpose.msra.mxu2 %v968_v11  ;;  %v499_v28 = vld [vmem:[%s2945_s3 + $0x38] sm:$0xff]  ;;  %v416_v30 = vld [vmem:[%s2244_s20 + $0xa0] sm:$0xff]  ;;  %v963_v32 = vld [vmem:[%s2252_s16 + $0xa8] sm:$0xff] }
  0x4b   : > { %531 = vperm.xlu0 %1823, %v493_v12   ;;  %686 = vmatpush.xpose.msra.mxu0 %v422_v13  ;;  %v960_v33 = vld [vmem:[%s2252_s16 + $0x90] sm:$0xff]  ;;  %v501_v34 = vld [vmem:[%s2945_s3 + $0x48] sm:$0xff]  ;;  %v415_v36 = vld [vmem:[%s2244_s20 + $0x98] sm:$0xff] }
  0x4c   : > { %799 = vmatpush.xpose.msra.mxu1 %v423_v14  ;;  %1345 = vmatpush.xpose.msra.mxu3 %v969_v15  ;;  %v414_v35 = vld [vmem:[%s2244_s20 + $0x90] sm:$0xff]  ;;  %v961_v37 = vld [vmem:[%s2252_s16 + $0x98] sm:$0xff]  ;;  %v500_v38 = vld [vmem:[%s2945_s3 + $0x40] sm:$0xff] }
  0x4d   : > { %541 = vperm.xlu1 %1824, %v495_v16   ;;  %v502_v39 = vld [vmem:[%s2945_s3 + $0x50] sm:$0xff]  ;;  %v958_v40 = vld [vmem:[%s2252_s16 + $0x80] sm:$0xff]  ;;  %v413_v42 = vld [vmem:[%s2244_s20 + $0x88] sm:$0xff] }
  0x4e   : > { %1233 = vmatpush.xpose.msra.mxu2 %v966_v17  ;;  %v412_v41 = vld [vmem:[%s2244_s20 + $0x80] sm:$0xff]  ;;  %v959_v43 = vld [vmem:[%s2252_s16 + $0x88] sm:$0xff]  ;;  %v956_v44 = vld [vmem:[%s2252_s16 + $0x70] sm:$0xff] }
  0x4f   : > { %687 = vmatpush.xpose.msra.mxu0 %v420_v19  ;;  %551 = vperm.xlu2 %1825, %v497_v27   ;;  %v504_v45 = vld [vmem:[%s2945_s3 + $0x60] sm:$0xff]  ;;  %v410_v46 = vld [vmem:[%s2244_s20 + $0x70] sm:$0xff]  ;;  %v411_v47 = vld [vmem:[%s2244_s20 + $0x78] sm:$0xff] }
  0x50   : > { %800 = vmatpush.xpose.msra.mxu1 %v421_v20  ;;  %1346 = vmatpush.xpose.msra.mxu3 %v967_v21  ;;  %v957_v48 = vld [vmem:[%s2252_s16 + $0x78] sm:$0xff]  ;;  %v505_v50 = vld [vmem:[%s2945_s3 + $0x68] sm:$0xff]  ;;  %v954_v51 = vld [vmem:[%s2252_s16 + $0x60] sm:$0xff] }
  0x51   : > { %v503_v49 = vld [vmem:[%s2945_s3 + $0x58] sm:$0xff]  ;;  %v408_v52 = vld [vmem:[%s2244_s20 + $0x60] sm:$0xff]  ;;  %v409_v53 = vld [vmem:[%s2244_s20 + $0x68] sm:$0xff] }
  0x52   : > { %1234 = vmatpush.xpose.msra.mxu2 %v964_v22  ;;  %v955_v54 = vld [vmem:[%s2252_s16 + $0x68] sm:$0xff]  ;;  %v952_v55 = vld [vmem:[%s2252_s16 + $0x50] sm:$0xff]  ;;  %v507_v56 = vld [vmem:[%s2945_s3 + $0x78] sm:$0xff] }
  0x53   : > { %556 = vperm.xlu0 %1823, %v498_v23   ;;  %688 = vmatpush.xpose.msra.mxu0 %v418_v24  ;;  %v406_v57 = vld [vmem:[%s2244_s20 + $0x50] sm:$0xff]  ;;  %v407_v58 = vld [vmem:[%s2244_s20 + $0x58] sm:$0xff]  ;;  %v508_v61 = vld [vmem:[%s2945_s3 + $0x80] sm:$0xff] }
  0x54   : > { %801 = vmatpush.xpose.msra.mxu1 %v419_v25  ;;  %1347 = vmatpush.xpose.msra.mxu3 %v965_v26  ;;  %v953_v59 = vld [vmem:[%s2252_s16 + $0x58] sm:$0xff]  ;;  %v506_v60 = vld [vmem:[%s2945_s3 + $0x70] sm:$0xff]  ;;  %v950_v62 = vld [vmem:[%s2252_s16 + $0x40] sm:$0xff] }
  0x55   : > { %561 = vperm.xlu1 %1824, %v499_v28   ;;  %v404_v63 = vld [vmem:[%s2244_s20 + $0x40] sm:$0xff]  ;;  %v405_v0 = vld [vmem:[%s2244_s20 + $0x48] sm:$0xff]  ;;  %v948_v2 = vld [vmem:[%s2252_s16 + $0x30] sm:$0xff] }
  0x56   : > { %1235 = vmatpush.xpose.msra.mxu2 %v962_v29  ;;  %v951_v1 = vld [vmem:[%s2252_s16 + $0x48] sm:$0xff]  ;;  %v510_v3 = vld [vmem:[%s2945_s3 + $0x90] sm:$0xff]  ;;  %v403_v5 = vld [vmem:[%s2244_s20 + $0x38] sm:$0xff] }
  0x57   : > { %689 = vmatpush.xpose.msra.mxu0 %v416_v30  ;;  %566 = vperm.xlu2 %1825, %v500_v38   ;;  %v402_v4 = vld [vmem:[%s2244_s20 + $0x30] sm:$0xff]  ;;  %v949_v6 = vld [vmem:[%s2252_s16 + $0x38] sm:$0xff]  ;;  %v509_v7 = vld [vmem:[%s2945_s3 + $0x88] sm:$0xff] }
  0x58   : > { %802 = vmatpush.xpose.msra.mxu1 %v417_v31  ;;  %1348 = vmatpush.xpose.msra.mxu3 %v963_v32  ;;  %v511_v8 = vld [vmem:[%s2945_s3 + $0x98] sm:$0xff]  ;;  %v946_v9 = vld [vmem:[%s2252_s16 + $0x20] sm:$0xff]  ;;  %v401_v11 = vld [vmem:[%s2244_s20 + $0x28] sm:$0xff] }
  0x59   : > { %v400_v10 = vld [vmem:[%s2244_s20 + $0x20] sm:$0xff]  ;;  %v947_v12 = vld [vmem:[%s2252_s16 + $0x28] sm:$0xff]  ;;  %v944_v13 = vld [vmem:[%s2252_s16 + $0x10] sm:$0xff] }
  0x5a   : > { %1236 = vmatpush.xpose.msra.mxu2 %v960_v33  ;;  %v513_v14 = vld [vmem:[%s2945_s3 + $0xa8] sm:$0xff]  ;;  %v398_v15 = vld [vmem:[%s2244_s20 + $0x10] sm:$0xff]  ;;  %v399_v16 = vld [vmem:[%s2244_s20 + $0x18] sm:$0xff] }
  0x5b   : > { %571 = vperm.xlu0 %1823, %v501_v34   ;;  %690 = vmatpush.xpose.msra.mxu0 %v414_v35  ;;  %v945_v17 = vld [vmem:[%s2252_s16 + $0x18] sm:$0xff]  ;;  %v512_v18 = vld [vmem:[%s2945_s3 + $0xa0] sm:$0xff]  ;;  %v514_v19 = vld [vmem:[%s2945_s3 + $0xb0] sm:$0xff] }
  0x5c   : > { %803 = vmatpush.xpose.msra.mxu1 %v415_v36  ;;  %1349 = vmatpush.xpose.msra.mxu3 %v961_v37  ;;  %v942_v20 = vld [vmem:[%s2252_s16] sm:$0xff]  ;;  %v397_v22 = vld [vmem:[%s2244_s20 + $0x8] sm:$0xff]  ;;  %v515_v29 = vld [vmem:[%s2945_s3 + $0xb8] sm:$0xff] }
  0x5d   : > { %576 = vperm.xlu1 %1824, %v502_v39   ;;  %v396_v21 = vld [vmem:[%s2244_s20] sm:$0xff]  ;;  %v943_v23 = vld [vmem:[%s2252_s16 + $0x8] sm:$0xff]  ;;  %v976_v31 = vld [vmem:[#allocation7 + $0x10] sm:$0xff]  ;;  %s1504_s20 = sadd.s32 %s2038_s27, %s1710_s11  ;;  %s1507_s27 = sshll.u32 %s2682_s14, 4  ;;  %s2884_s27 = int_to_ptr.vmem [resolvable:$true] %s1507_s27 }
  0x5e   : > { %1237 = vmatpush.xpose.msra.mxu2 %v958_v40  ;;  %v974_v24 = vld [vmem:[#allocation7] sm:$0xff]  ;;  %v429_v27 = vld [vmem:[%s2944_s2 + $0x8] sm:$0xff]  ;;  %v430_v32 = vld [vmem:[%s2944_s2 + $0x10] sm:$0xff]  ;;  %s1711_s16 = sshll.u32 %s1504_s20, 3 }
  0x5f   : > { %691 = vmatpush.xpose.msra.mxu0 %v412_v41  ;;  %581 = vperm.xlu2 %1825, %v503_v49   ;;  %v428_v25 = vld [vmem:[%s2944_s2] sm:$0xff]  ;;  %v975_v28 = vld [vmem:[#allocation7 + $0x8] sm:$0xff]  ;;  %v519_v33 = vld [vmem:[%s2945_s3 + $0xd8] sm:$0xff]  ;;  %s1506_s10 = scalar_lea.hbm %s2984_s28, %s1711_s16  ;;  %s2881_s13 = scalar_lea.hbm %s2986_s17, %s1711_s16 }
  0x60   : > { %804 = vmatpush.xpose.msra.mxu1 %v413_v42  ;;  %1350 = vmatpush.xpose.msra.mxu3 %v959_v43  ;;  %v516_v26 = vld [vmem:[%s2945_s3 + $0xc0] sm:$0xff]  ;;  %v517_v30 = vld [vmem:[%s2945_s3 + $0xc8] sm:$0xff]  ;;  %v431_v34 = vld [vmem:[%s2944_s2 + $0x18] sm:$0xff]  ;;  %s1509_s21 = sshll.u32 %s1506_s10, 4  ;;  %s1527_s22 = sshll.u32 %s2881_s13, 4  ;;  %s1510_s21 = int_to_ptr.hbm [resolvable:$true] %s1509_s21  ;;  %s1528_s22 = int_to_ptr.hbm [resolvable:$true] %s1527_s22 }
  0x61   : > { %v977_v35 = vld [vmem:[#allocation7 + $0x18] sm:$0xff]  ;;  %v518_v36 = vld [vmem:[%s2945_s3 + $0xd0] sm:$0xff]  ;;  %v520_v37 = vld [vmem:[%s2945_s3 + $0xe0] sm:$0xff]  ;;  %s1930_s24 = sshra.s32 %s1510_s21, 4  ;;  %s1936_s16 = scalar_lea.hbm %s2985_s19, 1024  ;;  %s1931_s24 = int_to_ptr.hbm [resolvable:$true] %s1930_s24 }
  0x62   : > { %1238 = vmatpush.xpose.msra.mxu2 %v956_v44  ;;  %v978_v38 = vld [vmem:[#allocation7 + $0x20] sm:$0xff]  ;;  %v522_v40 = vld [vmem:[%s2945_s3 + $0xf0] sm:$0xff]  ;;  %v433_v41 = vld [vmem:[%s2944_s2 + $0x28] sm:$0xff]  ;;  %s1932_s12 = scalar_lea.hbm %s1931_s24, 256  ;;  %p1937_p10 = scmp.lt.s32.totalorder %s1931_s24, %s2985_s19 }
  0x63   : > { %586 = vperm.xlu0 %1823, %v504_v45   ;;  %692 = vmatpush.xpose.msra.mxu0 %v410_v46  ;;  %v432_v39 = vld [vmem:[%s2944_s2 + $0x20] sm:$0xff]  ;;  %v979_v42 = vld [vmem:[#allocation7 + $0x28] sm:$0xff]  ;;  %v523_v44 = vld [vmem:[%s2945_s3 + $0xf8] sm:$0xff]  ;;  %p1933_p1 = scmp.ne.s32.totalorder %s1931_s24, %s1932_s12  ;;  %p1938_p11 = scmp.lt.s32.totalorder %s1936_s16, %s1932_s12 }
  0x64   : > { %805 = vmatpush.xpose.msra.mxu1 %v411_v47  ;;  %1351 = vmatpush.xpose.msra.mxu3 %v957_v48  ;;  %v521_v43 = vld [vmem:[%s2945_s3 + $0xe8] sm:$0xff]  ;;  %v980_v45 = vld [vmem:[#allocation7 + $0x30] sm:$0xff]  ;;  %v435_v48 = vld [vmem:[%s2944_s2 + $0x38] sm:$0xff] }
  0x65   : > { %591 = vperm.xlu1 %1824, %v505_v50   ;;  %v434_v46 = vld [vmem:[%s2944_s2 + $0x30] sm:$0xff]  ;;  %v1039_v47 = vld [vmem:[%s2947_s5 + $0x8] sm:$0xff]  ;;  %v981_v49 = vld [vmem:[#allocation7 + $0x38] sm:$0xff]  ;;  %p1934_p4 = pnand %p1933_p1, %p2190_p3  ;;  %p1939_p12 = por %p1938_p11, %p1937_p10 }
  0x66   : > { %1239 = vmatpush.xpose.msra.mxu2 %v954_v51  ;;  %v1038_v50 = vld [vmem:[%s2947_s5] sm:$0xff]  ;;  %v1040_v51 = vld [vmem:[%s2947_s5 + $0x10] sm:$0xff] }
  0x67   : > { %693 = vmatpush.xpose.msra.mxu0 %v408_v52  ;;  %596 = vperm.xlu2 %1825, %v506_v60   ;;  %v982_v52 = vld [vmem:[#allocation7 + $0x40] sm:$0xff]  ;;  %p1935_p8 = pneg %p1934_p4 }
  0x68   : > { %806 = vmatpush.xpose.msra.mxu1 %v409_v53  ;;  %1352 = vmatpush.xpose.msra.mxu3 %v955_v54  ;;  %v436_v53 = vld [vmem:[%s2944_s2 + $0x40] sm:$0xff] }
  0x69   : > { %v1042_v54 = vld [vmem:[%s2947_s5 + $0x20] sm:$0xff]  ;;  %p1940_p13 = pnand %p1939_p12, %p1935_p8 }
  0x6a   : > { %1240 = vmatpush.xpose.msra.mxu2 %v952_v55  ;;  %v437_v55 = vld [vmem:[%s2944_s2 + $0x48] sm:$0xff] }
  0x6b   : > { %601 = vperm.xlu0 %1823, %v507_v56   ;;  %694 = vmatpush.xpose.msra.mxu0 %v406_v57  ;;  %v983_v56 = vld [vmem:[#allocation7 + $0x48] sm:$0xff]  ;;  %v1041_v57 = vld [vmem:[%s2947_s5 + $0x18] sm:$0xff] }
  0x6c   : > { %807 = vmatpush.xpose.msra.mxu1 %v407_v58  ;;  %1353 = vmatpush.xpose.msra.mxu3 %v953_v59  ;;  %v1043_v58 = vld [vmem:[%s2947_s5 + $0x28] sm:$0xff]  ;;  %v984_v59 = vld [vmem:[#allocation7 + $0x50] sm:$0xff] }
  0x6d   : > { %606 = vperm.xlu1 %1824, %v508_v61   ;;  %v438_v61 = vld [vmem:[%s2944_s2 + $0x50] sm:$0xff] }
  0x6e   : > { %1241 = vmatpush.xpose.msra.mxu2 %v950_v62  ;;  %v1045_v62 = vld [vmem:[%s2947_s5 + $0x38] sm:$0xff] }
  0x6f   : > { %695 = vmatpush.xpose.msra.mxu0 %v404_v63  ;;  %611 = vperm.xlu2 %1825, %v509_v7   ;;  %v439_v63 = vld [vmem:[%s2944_s2 + $0x58] sm:$0xff]  ;;  %v441_v7 = vld [vmem:[%s2944_s2 + $0x68] sm:$0xff] }
  0x70   : > { %808 = vmatpush.xpose.msra.mxu1 %v405_v0  ;;  %1354 = vmatpush.xpose.msra.mxu3 %v951_v1  ;;  %v985_v0 = vld [vmem:[#allocation7 + $0x58] sm:$0xff]  ;;  %v1044_v1 = vld [vmem:[%s2947_s5 + $0x30] sm:$0xff] }
  0x72   : > { %1242 = vmatpush.xpose.msra.mxu2 %v948_v2  ;;  %v1046_v2 = vld [vmem:[%s2947_s5 + $0x40] sm:$0xff] }
  0x73   : > { %616 = vperm.xlu0 %1823, %v510_v3   ;;  %696 = vmatpush.xpose.msra.mxu0 %v402_v4  ;;  %v986_v3 = vld [vmem:[#allocation7 + $0x60] sm:$0xff] }
  0x74   : > { %809 = vmatpush.xpose.msra.mxu1 %v403_v5  ;;  %1355 = vmatpush.xpose.msra.mxu3 %v949_v6  ;;  %v440_v5 = vld [vmem:[%s2944_s2 + $0x60] sm:$0xff]  ;;  %v1048_v6 = vld [vmem:[%s2947_s5 + $0x50] sm:$0xff] }
  0x75   : > { %621 = vperm.xlu1 %1824, %v511_v8   ;;  %v987_v8 = vld [vmem:[#allocation7 + $0x68] sm:$0xff] }
  0x76   : > { %1243 = vmatpush.xpose.msra.mxu2 %v946_v9  ;;  %v1047_v9 = vld [vmem:[%s2947_s5 + $0x48] sm:$0xff] }
  0x77   : > { %697 = vmatpush.xpose.msra.mxu0 %v400_v10  ;;  %626 = vperm.xlu2 %1825, %v512_v18   ;;  %v1049_v10 = vld [vmem:[%s2947_s5 + $0x58] sm:$0xff] }
  0x78   : > { %810 = vmatpush.xpose.msra.mxu1 %v401_v11  ;;  %1356 = vmatpush.xpose.msra.mxu3 %v947_v12  ;;  %v988_v12 = vld [vmem:[#allocation7 + $0x70] sm:$0xff]  ;;  %v989_v18 = vld [vmem:[#allocation7 + $0x78] sm:$0xff] }
  0x7a   : > { %1244 = vmatpush.xpose.msra.mxu2 %v944_v13 }
  0x7b   : > { %631 = vperm.xlu0 %1823, %v513_v14   ;;  %698 = vmatpush.xpose.msra.mxu0 %v398_v15  ;;  %v442_v14 = vld [vmem:[%s2944_s2 + $0x70] sm:$0xff]  ;;  %v1051_v15 = vld [vmem:[%s2947_s5 + $0x68] sm:$0xff] }
  0x7c   : > { %811 = vmatpush.xpose.msra.mxu1 %v399_v16  ;;  %1357 = vmatpush.xpose.msra.mxu3 %v945_v17  ;;  %v443_v17 = vld [vmem:[%s2944_s2 + $0x78] sm:$0xff] }
  0x7d   : > { %636 = vperm.xlu1 %1824, %v514_v19   ;;  %v1050_v19 = vld [vmem:[%s2947_s5 + $0x60] sm:$0xff] }
  0x7e   : > { %1245 = vmatpush.xpose.msra.mxu2 %v942_v20  ;;  %v1052_v20 = vld [vmem:[%s2947_s5 + $0x70] sm:$0xff] }
  0x7f   : > { %699 = vmatpush.xpose.msra.mxu0 %v396_v21  ;;  %641 = vperm.xlu2 %1825, %v515_v29   ;;  %v1053_v29 = vld [vmem:[%s2947_s5 + $0x78] sm:$0xff] }
  0x80   : > { %812 = vmatpush.xpose.msra.mxu1 %v397_v22  ;;  %1358 = vmatpush.xpose.msra.mxu3 %v943_v23  ;;  %v990_v22 = vld [vmem:[#allocation7 + $0x80] sm:$0xff] }
  0x81   : > { %1246 = vmatmul.f32.vlgmr.msra.gmra.mxu2 %v974_v24  ;;  %v444_v24 = vld [vmem:[%s2944_s2 + $0x80] sm:$0xff] }
  0x82   : > { %700 = vmatmul.f32.vlgmr.msra.gmra.mxu0 %v428_v25  ;;  %v1054_v25 = vld [vmem:[%s2947_s5 + $0x80] sm:$0xff] }
  0x83   : > { %646 = vperm.xlu0 %1823, %v516_v26   ;;  %813 = vmatmul.f32.vlgmr.msra.gmra.mxu1 %v429_v27  ;;  %v445_v27 = vld [vmem:[%s2944_s2 + $0x88] sm:$0xff] }
  0x84   : > { %1359 = vmatmul.f32.vlgmr.msra.gmra.mxu3 %v975_v28  ;;  %v991_v28 = vld [vmem:[#allocation7 + $0x88] sm:$0xff] }
  0x85   : > { %651 = vperm.xlu1 %1824, %v517_v30   ;;  %v1055_v30 = vld [vmem:[%s2947_s5 + $0x88] sm:$0xff] }
  0x87   : > { %656 = vperm.xlu2 %1825, %v518_v36  }
  0x89   : > { %1249 = vmatmul.f32.gmra.mxu2 %v976_v31 }
  0x8a   : > { %703 = vmatmul.f32.gmra.mxu0 %v430_v32  ;;  %v992_v32 = vld [vmem:[#allocation7 + $0x90] sm:$0xff] }
  0x8b   : > { %661 = vperm.xlu0 %1823, %v519_v33   ;;  %816 = vmatmul.f32.gmra.mxu1 %v431_v34  ;;  %v446_v34 = vld [vmem:[%s2944_s2 + $0x90] sm:$0xff] }
  0x8c   : > { %1362 = vmatmul.f32.gmra.mxu3 %v977_v35  ;;  %v1057_v35 = vld [vmem:[%s2947_s5 + $0x98] sm:$0xff] }
  0x8d   : > { %666 = vperm.xlu1 %1824, %v520_v37   ;;  %v447_v37 = vld [vmem:[%s2944_s2 + $0x98] sm:$0xff] }
  0x8f   : > { %671 = vperm.xlu2 %1825, %v521_v43   ;;  %v448_v43 = vld [vmem:[%s2944_s2 + $0xa0] sm:$0xff] }
  0x91   : > { %1252 = vmatmul.f32.gmra.mxu2 %v978_v38  ;;  %v993_v38 = vld [vmem:[#allocation7 + $0x98] sm:$0xff] }
  0x92   : > { %706 = vmatmul.f32.gmra.mxu0 %v432_v39  ;;  %v1056_v39 = vld [vmem:[%s2947_s5 + $0x90] sm:$0xff] }
  0x93   : > { %676 = vperm.xlu0 %1823, %v522_v40   ;;  %819 = vmatmul.f32.gmra.mxu1 %v433_v41  ;;  %v1058_v40 = vld [vmem:[%s2947_s5 + $0xa0] sm:$0xff] }
  0x94   : > { %1365 = vmatmul.f32.gmra.mxu3 %v979_v42  ;;  %v994_v42 = vld [vmem:[#allocation7 + $0xa0] sm:$0xff] }
  0x95   : > { %681 = vperm.xlu1 %1824, %v523_v44   ;;  %v1060_v44 = vld [vmem:[%s2947_s5 + $0xb0] sm:$0xff] }
  0x97   : > { %1072 = vperm.xlu2 %1825, %v1038_v50   ;;  %v1061_v50 = vld [vmem:[%s2947_s5 + $0xb8] sm:$0xff] }
  0x99   : > { %1255 = vmatmul.f32.gmra.mxu2 %v980_v45 }
  0x9a   : > { %709 = vmatmul.f32.gmra.mxu0 %v434_v46  ;;  %v449_v46 = vld [vmem:[%s2944_s2 + $0xa8] sm:$0xff] }
  0x9b   : > { %1077 = vperm.xlu0 %1823, %v1039_v47   ;;  %822 = vmatmul.f32.gmra.mxu1 %v435_v48  ;;  %v995_v47 = vld [vmem:[#allocation7 + $0xa8] sm:$0xff] }
  0x9c   : > { %1368 = vmatmul.f32.gmra.mxu3 %v981_v49  ;;  %v1059_v49 = vld [vmem:[%s2947_s5 + $0xa8] sm:$0xff] }
  0x9d   : > { %1082 = vperm.xlu1 %1824, %v1040_v51  }
  0x9f   : > { %1087 = vperm.xlu2 %1825, %v1041_v57   ;;  %v997_v57 = vld [vmem:[#allocation7 + $0xb8] sm:$0xff] }
  0xa1   : > { %1258 = vmatmul.f32.gmra.mxu2 %v982_v52  ;;  %v2470_v60 = vpop.permute.xlu2 %546  ;;  %v996_v52 = vld [vmem:[#allocation7 + $0xb0] sm:$0xff] }
  0xa2   : > { %712 = vmatmul.f32.gmra.mxu0 %v436_v53  ;;  %v450_v53 = vld [vmem:[%s2944_s2 + $0xb0] sm:$0xff] }
  0xa3   : > { %1092 = vperm.xlu0 %1823, %v1042_v54   ;;  %825 = vmatmul.f32.gmra.mxu1 %v437_v55  ;;  %v1063_v54 = vld [vmem:[%s2947_s5 + $0xc8] sm:$0xff] }
  0xa4   : > { %1371 = vmatmul.f32.gmra.mxu3 %v983_v56  ;;  %v451_v56 = vld [vmem:[%s2944_s2 + $0xb8] sm:$0xff] }
  0xa5   : > { %1097 = vperm.xlu1 %1824, %v1043_v58   ;;  %v1062_v58 = vld [vmem:[%s2947_s5 + $0xc0] sm:$0xff] }
  0xa7   : > { %1102 = vperm.xlu2 %1825, %v1044_v1   ;;  %v1066_v1 = vld [vmem:[%s2947_s5 + $0xe0] sm:$0xff] }
  0xa9   : > { %1261 = vmatmul.f32.gmra.mxu2 %v984_v59  ;;  %v2487_v4 = vpop.permute.xlu2 %551  ;;  %v1064_v59 = vld [vmem:[%s2947_s5 + $0xd0] sm:$0xff] }
  0xaa   : > { %715 = vmatmul.f32.gmra.mxu0 %v438_v61 }
  0xab   : > { %1107 = vperm.xlu0 %1823, %v1045_v62   ;;  %828 = vmatmul.f32.gmra.mxu1 %v439_v63  ;;  %v998_v63 = vld [vmem:[#allocation7 + $0xc0] sm:$0xff] }
  0xac   : > { %1374 = vmatmul.f32.gmra.mxu3 %v985_v0  ;;  %v452_v0 = vld [vmem:[%s2944_s2 + $0xc0] sm:$0xff] }
  0xad   : > { %1112 = vperm.xlu1 %1824, %v1046_v2  }
  0xaf   : > { %1117 = vperm.xlu2 %1825, %v1047_v9  }
  0xb1   : > { %1264 = vmatmul.f32.gmra.mxu2 %v986_v3  ;;  %v2506_v13 = vpop.permute.xlu2 %566  ;;  %v453_v3 = vld [vmem:[%s2944_s2 + $0xc8] sm:$0xff] }
  0xb2   : > { %718 = vmatmul.f32.gmra.mxu0 %v440_v5  ;;  %v999_v5 = vld [vmem:[#allocation7 + $0xc8] sm:$0xff] }
  0xb3   : > { %1122 = vperm.xlu0 %1823, %v1048_v6   ;;  %831 = vmatmul.f32.gmra.mxu1 %v441_v7  ;;  %v1065_v6 = vld [vmem:[%s2947_s5 + $0xd8] sm:$0xff]  ;;  %v1067_v7 = vld [vmem:[%s2947_s5 + $0xe8] sm:$0xff] }
  0xb4   : > { %1377 = vmatmul.f32.gmra.mxu3 %v987_v8 }
  0xb5   : > { %v2504_v11 = vpop.permute.xlu0 %526  ;;  %1127 = vperm.xlu1 %1824, %v1049_v10   ;;  %v1000_v10 = vld [vmem:[#allocation7 + $0xd0] sm:$0xff] }
  0xb7   : > { %v2514_v16 = vpop.permute.xlu1 %536  ;;  %1132 = vperm.xlu2 %1825, %v1050_v19   ;;  %v1068_v19 = vld [vmem:[%s2947_s5 + $0xf0] sm:$0xff] }
  0xb9   : > { %1267 = vmatmul.f32.gmra.mxu2 %v988_v12  ;;  %v2527_v23 = vpop.permute.xlu2 %581  ;;  %v454_v12 = vld [vmem:[%s2944_s2 + $0xd0] sm:$0xff] }
  0xba   : > { %721 = vmatmul.f32.gmra.mxu0 %v442_v14  ;;  %v1069_v14 = vld [vmem:[%s2947_s5 + $0xf8] sm:$0xff] }
  0xbb   : > { %1137 = vperm.xlu0 %1823, %v1051_v15   ;;  %834 = vmatmul.f32.gmra.mxu1 %v443_v17  ;;  %v455_v17 = vld [vmem:[%s2944_s2 + $0xd8] sm:$0xff] }
  0xbc   : > { %1380 = vmatmul.f32.gmra.mxu3 %v989_v18  ;;  %v1001_v18 = vld [vmem:[#allocation7 + $0xd8] sm:$0xff] }
  0xbd   : > { %v2525_v21 = vpop.permute.xlu0 %531  ;;  %1142 = vperm.xlu1 %1824, %v1052_v20  }
  0xbf   : > { %v2535_v26 = vpop.permute.xlu1 %541  ;;  %1147 = vperm.xlu2 %1825, %v1053_v29   ;;  %v1003_v29 = vld [vmem:[#allocation7 + $0xe8] sm:$0xff] }
  0xc1   : > { %1270 = vmatmul.f32.gmra.mxu2 %v990_v22  ;;  %v2548_v33 = vpop.permute.xlu2 %596  ;;  %v1002_v22 = vld [vmem:[#allocation7 + $0xe0] sm:$0xff] }
  0xc2   : > { %724 = vmatmul.f32.gmra.mxu0 %v444_v24 }
  0xc3   : > { %1152 = vperm.xlu0 %1823, %v1054_v25   ;;  %837 = vmatmul.f32.gmra.mxu1 %v445_v27  ;;  %v456_v25 = vld [vmem:[%s2944_s2 + $0xe0] sm:$0xff] }
  0xc4   : > { %1383 = vmatmul.f32.gmra.mxu3 %v991_v28  ;;  %v457_v28 = vld [vmem:[%s2944_s2 + $0xe8] sm:$0xff] }
  0xc5   : > { %v2546_v31 = vpop.permute.xlu0 %556  ;;  %1157 = vperm.xlu1 %1824, %v1055_v30  }
  0xc7   : > { %v2556_v36 = vpop.permute.xlu1 %561  ;;  %1162 = vperm.xlu2 %1825, %v1056_v39  }
  0xc9   : > { %1273 = vmatmul.f32.gmra.mxu2 %v992_v32  ;;  %v2580_v48 = vpop.permute.xlu2 %611  ;;  %v1004_v32 = vld [vmem:[#allocation7 + $0xf0] sm:$0xff] }
  0xca   : > { %727 = vmatmul.f32.gmra.mxu0 %v446_v34  ;;  %v458_v34 = vld [vmem:[%s2944_s2 + $0xf0] sm:$0xff] }
  0xcb   : > { %1167 = vperm.xlu0 %1823, %v1057_v35   ;;  %840 = vmatmul.f32.gmra.mxu1 %v447_v37  ;;  %v459_v37 = vld [vmem:[%s2944_s2 + $0xf8] sm:$0xff] }
  0xcc   : > { %1386 = vmatmul.f32.gmra.mxu3 %v993_v38  ;;  %v1005_v38 = vld [vmem:[#allocation7 + $0xf8] sm:$0xff] }
  0xcd   : > { %v2567_v41 = vpop.permute.xlu0 %571  ;;  %1172 = vperm.xlu1 %1824, %v1058_v40  }
  0xcf   : > { %v2575_v45 = vpop.permute.xlu1 %576  ;;  %1177 = vperm.xlu2 %1825, %v1059_v49  }
  0xd1   : > { %1276 = vmatmul.f32.gmra.mxu2 %v994_v42  ;;  %v2607_v61 = vpop.permute.xlu2 %626  ;;  %v1006_v42 = vld [vmem:[#allocation7 + $0x100] sm:$0xff] }
  0xd2   : > { %730 = vmatmul.f32.gmra.mxu0 %v448_v43 }
  0xd3   : > { %1182 = vperm.xlu0 %1823, %v1060_v44   ;;  %843 = vmatmul.f32.gmra.mxu1 %v449_v46  ;;  %v460_v44 = vld [vmem:[%s2944_s2 + $0x100] sm:$0xff] }
  0xd4   : > { %1389 = vmatmul.f32.gmra.mxu3 %v995_v47 }
  0xd5   : > { %v2588_v51 = vpop.permute.xlu0 %586  ;;  %1187 = vperm.xlu1 %1824, %v1061_v50   ;;  %v461_v50 = vld [vmem:[%s2944_s2 + $0x108] sm:$0xff] }
  0xd7   : > { %v2596_v55 = vpop.permute.xlu1 %591  ;;  %1192 = vperm.xlu2 %1825, %v1062_v58  }
  0xd9   : > { %1279 = vmatmul.f32.gmra.mxu2 %v996_v52  ;;  %v2630_v9 = vpop.permute.xlu2 %641  ;;  %v1007_v52 = vld [vmem:[#allocation7 + $0x108] sm:$0xff] }
  0xda   : > { %733 = vmatmul.f32.gmra.mxu0 %v450_v53 }
  0xdb   : > { %1197 = vperm.xlu0 %1823, %v1063_v54   ;;  %846 = vmatmul.f32.gmra.mxu1 %v451_v56 }
  0xdc   : > { %1392 = vmatmul.f32.gmra.mxu3 %v997_v57 }
  0xdd   : > { %v2609_v62 = vpop.permute.xlu0 %601  ;;  %1202 = vperm.xlu1 %1824, %v1064_v59   ;;  %v1008_v59 = vld [vmem:[#allocation7 + $0x110] sm:$0xff] }
  0xdf   : > { %v2617_v2 = vpop.permute.xlu1 %606  ;;  %1207 = vperm.xlu2 %1825, %v1065_v6   ;;  %v463_v6 = vld [vmem:[%s2944_s2 + $0x118] sm:$0xff] }
  0xe1   : > { %1282 = vmatmul.f32.gmra.mxu2 %v998_v63  ;;  %v2648_v24 = vpop.permute.xlu2 %656 }
  0xe2   : > { %736 = vmatmul.f32.gmra.mxu0 %v452_v0 }
  0xe3   : > { %1212 = vperm.xlu0 %1823, %v1066_v1   ;;  %849 = vmatmul.f32.gmra.mxu1 %v453_v3  ;;  %v462_v1 = vld [vmem:[%s2944_s2 + $0x110] sm:$0xff] }
  0xe4   : > { %1395 = vmatmul.f32.gmra.mxu3 %v999_v5 }
  0xe5   : > { %v2628_v8 = vpop.permute.xlu0 %616  ;;  %1217 = vperm.xlu1 %1824, %v1067_v7   ;;  %v1009_v7 = vld [vmem:[#allocation7 + $0x118] sm:$0xff] }
  0xe7   : > { %v2638_v15 = vpop.permute.xlu1 %621  ;;  %1222 = vperm.xlu2 %1825, %v1068_v19   ;;  %v1010_v19 = vld [vmem:[#allocation7 + $0x120] sm:$0xff] }
  0xe9   : > { %1285 = vmatmul.f32.gmra.mxu2 %v1000_v10  ;;  %v2668_v39 = vpop.permute.xlu2 %671 }
  0xea   : > { %739 = vmatmul.f32.gmra.mxu0 %v454_v12 }
  0xeb   : > { %1227 = vperm.xlu0 %1823, %v1069_v14   ;;  %852 = vmatmul.f32.gmra.mxu1 %v455_v17 }
  0xec   : > { %1398 = vmatmul.f32.gmra.mxu3 %v1001_v18 }
  0xed   : > { %v2646_v20 = vpop.permute.xlu0 %631 }
  0xef   : > { %v2653_v27 = vpop.permute.xlu1 %636 }
  0xf1   : > { %1288 = vmatmul.f32.gmra.mxu2 %v1002_v22  ;;  %v1073_v54 = vpop.permute.xlu2 %1072 }
  0xf2   : > { %742 = vmatmul.f32.gmra.mxu0 %v456_v25 }
  0xf3   : > { %855 = vmatmul.f32.gmra.mxu1 %v457_v28  ;;  %v464_v28 = vld [vmem:[%s2944_s2 + $0x120] sm:$0xff] }
  0xf4   : > { %1401 = vmatmul.f32.gmra.mxu3 %v1003_v29 }
  0xf5   : > { %v2658_v30 = vpop.permute.xlu0 %646 }
  0xf7   : > { %v2663_v35 = vpop.permute.xlu1 %651 }
  0xf9   : > { %1291 = vmatmul.f32.gmra.mxu2 %v1004_v32 }
  0xfa   : > { %745 = vmatmul.f32.gmra.mxu0 %v458_v34  ;;  %v465_v34 = vld [vmem:[%s2944_s2 + $0x128] sm:$0xff] }
  0xfb   : > { %858 = vmatmul.f32.gmra.mxu1 %v459_v37  ;;  %v1011_v37 = vld [vmem:[#allocation7 + $0x128] sm:$0xff] }
  0xfc   : > { %1404 = vmatmul.f32.gmra.mxu3 %v1005_v38 }
  0xfd   : > { %v2670_v40 = vpop.permute.xlu0 %661 }
  0xff   : > { %v701_v43 = vpop.f32.mrf.mxu0  ;;  %v2675_v46 = vpop.permute.xlu1 %666 }
 0x100   : > { %v702_v47 = vadd.f32 %v701_v43, %v2504_v11  ;;  %v814_v49 = vpop.f32.mrf.mxu1 }
 0x101   : > { %1294 = vmatmul.f32.gmra.mxu2 %v1006_v42 }
 0x102   : > { %v815_v53 = vadd.f32 %v814_v49, %v702_v47  ;;  %748 = vmatmul.f32.gmra.mxu0 %v460_v44 }
 0x103   : > { %861 = vmatmul.f32.gmra.mxu1 %v461_v50 }
 0x104   : > { %1407 = vmatmul.f32.gmra.mxu3 %v1007_v52  ;;  %910 = vst [vmem:[%s2682_s14] sm:$0xff] %v815_v53  ;;  %v1247_v56 = vpop.f32.mrf.mxu2  ;;  %v466_v52 = vld [vmem:[%s2944_s2 + $0x130] sm:$0xff] }
 0x105   : > { %v2685_v57 = vpop.permute.xlu0 %676  ;;  %v1248_v11 = vadd.f32 %v1247_v56, %v1073_v54  ;;  %v467_v56 = vld [vmem:[%s2944_s2 + $0x138] sm:$0xff] }
 0x107   : > { %v1360_v58 = vpop.f32.mrf.mxu3  ;;  %v704_v63 = vpop.f32.mrf.mxu0 }
 0x108   : > { %v1361_v0 = vadd.f32 %v1360_v58, %v1248_v11  ;;  %v705_v3 = vadd.f32 %v704_v63, %v2525_v21  ;;  %v817_v5 = vpop.f32.mrf.mxu1  ;;  %v2694_v10 = vpop.permute.xlu1 %681  ;;  %v1013_v11 = vld [vmem:[#allocation7 + $0x138] sm:$0xff] }
 0x109   : > { %1297 = vmatmul.f32.gmra.mxu2 %v1008_v59  ;;  %v1088_v59 = vpop.permute.xlu2 %1087 }
 0x10a   : > { %1456 = vst [vmem:[%s2697_s6] sm:$0xff] %v1361_v0  ;;  %v818_v12 = vadd.f32 %v817_v5, %v705_v3  ;;  %751 = vmatmul.f32.gmra.mxu0 %v462_v1 }
 0x10b   : > { %864 = vmatmul.f32.gmra.mxu1 %v463_v6  ;;  %v468_v6 = vld [vmem:[%s2944_s2 + $0x140] sm:$0xff] }
 0x10c   : > { %1410 = vmatmul.f32.gmra.mxu3 %v1009_v7  ;;  %911 = vst [vmem:[%s2682_s14 + $0x8] sm:$0xff] %v818_v12  ;;  %v1250_v21 = vpop.f32.mrf.mxu2 }
 0x10d   : > { %v1078_v14 = vpop.permute.xlu0 %1077 }
 0x10e   : > { %v1251_v17 = vadd.f32 %v1250_v21, %v1078_v14  ;;  %v469_v21 = vld [vmem:[%s2944_s2 + $0x148] sm:$0xff] }
 0x10f   : > { %v1363_v18 = vpop.f32.mrf.mxu3  ;;  %v707_v22 = vpop.f32.mrf.mxu0  ;;  %v1015_v14 = vld [vmem:[#allocation7 + $0x148] sm:$0xff] }
 0x110   : > { %v1364_v25 = vadd.f32 %v1363_v18, %v1251_v17  ;;  %v708_v29 = vadd.f32 %v707_v22, %v2514_v16  ;;  %v820_v32 = vpop.f32.mrf.mxu1  ;;  %v1083_v42 = vpop.permute.xlu1 %1082  ;;  %v1012_v16 = vld [vmem:[#allocation7 + $0x130] sm:$0xff] }
 0x111   : > { %1300 = vmatmul.f32.gmra.mxu2 %v1010_v19 }
 0x112   : > { %1457 = vst [vmem:[%s2697_s6 + $0x8] sm:$0xff] %v1364_v25  ;;  %v821_v38 = vadd.f32 %v820_v32, %v708_v29  ;;  %754 = vmatmul.f32.gmra.mxu0 %v464_v28  ;;  %v470_v32 = vld [vmem:[%s2944_s2 + $0x150] sm:$0xff] }
 0x113   : > { %867 = vmatmul.f32.gmra.mxu1 %v465_v34 }
 0x114   : > { %1413 = vmatmul.f32.gmra.mxu3 %v1011_v37  ;;  %912 = vst [vmem:[%s2682_s14 + $0x10] sm:$0xff] %v821_v38  ;;  %v1253_v43 = vpop.f32.mrf.mxu2  ;;  %v471_v38 = vld [vmem:[%s2944_s2 + $0x158] sm:$0xff] }
 0x115   : > { %v1254_v44 = vadd.f32 %v1253_v43, %v1083_v42  ;;  %v1093_v18 = vpop.permute.xlu0 %1092  ;;  %v1017_v42 = vld [vmem:[#allocation7 + $0x158] sm:$0xff] }
 0x117   : > { %v1366_v47 = vpop.f32.mrf.mxu3  ;;  %v710_v49 = vpop.f32.mrf.mxu0 }
 0x118   : > { %v1367_v50 = vadd.f32 %v1366_v47, %v1254_v44  ;;  %v711_v53 = vadd.f32 %v710_v49, %v2535_v26  ;;  %v823_v54 = vpop.f32.mrf.mxu1  ;;  %v1014_v26 = vld [vmem:[#allocation7 + $0x140] sm:$0xff]  ;;  %v1098_v44 = vpop.permute.xlu1 %1097 }
 0x119   : > { %1303 = vmatmul.f32.gmra.mxu2 %v1012_v16 }
 0x11a   : > { %1458 = vst [vmem:[%s2697_s6 + $0x10] sm:$0xff] %v1367_v50  ;;  %v824_v58 = vadd.f32 %v823_v54, %v711_v53  ;;  %757 = vmatmul.f32.gmra.mxu0 %v466_v52  ;;  %v472_v53 = vld [vmem:[%s2944_s2 + $0x160] sm:$0xff] }
 0x11b   : > { %870 = vmatmul.f32.gmra.mxu1 %v467_v56 }
 0x11c   : > { %1416 = vmatmul.f32.gmra.mxu3 %v1013_v11  ;;  %913 = vst [vmem:[%s2682_s14 + $0x18] sm:$0xff] %v824_v58  ;;  %v1256_v63 = vpop.f32.mrf.mxu2  ;;  %v473_v11 = vld [vmem:[%s2944_s2 + $0x168] sm:$0xff] }
 0x11d   : > { %v1257_v0 = vadd.f32 %v1256_v63, %v1088_v59  ;;  %v1019_v58 = vld [vmem:[#allocation7 + $0x168] sm:$0xff]  ;;  %v1103_v63 = vpop.permute.xlu2 %1102 }
 0x11f   : > { %v1369_v1 = vpop.f32.mrf.mxu3  ;;  %v713_v3 = vpop.f32.mrf.mxu0 }
 0x120   : > { %v1370_v5 = vadd.f32 %v1369_v1, %v1257_v0  ;;  %v714_v7 = vadd.f32 %v713_v3, %v2470_v60  ;;  %v826_v12 = vpop.f32.mrf.mxu1  ;;  %v1016_v60 = vld [vmem:[#allocation7 + $0x150] sm:$0xff] }
 0x121   : > { %1306 = vmatmul.f32.gmra.mxu2 %v1014_v26 }
 0x122   : > { %1459 = vst [vmem:[%s2697_s6 + $0x18] sm:$0xff] %v1370_v5  ;;  %v827_v17 = vadd.f32 %v826_v12, %v714_v7  ;;  %760 = vmatmul.f32.gmra.mxu0 %v468_v6  ;;  %v474_v6 = vld [vmem:[%s2944_s2 + $0x170] sm:$0xff] }
 0x123   : > { %873 = vmatmul.f32.gmra.mxu1 %v469_v21  ;;  %v475_v21 = vld [vmem:[%s2944_s2 + $0x178] sm:$0xff] }
 0x124   : > { %1419 = vmatmul.f32.gmra.mxu3 %v1015_v14  ;;  %914 = vst [vmem:[%s2682_s14 + $0x20] sm:$0xff] %v827_v17  ;;  %v1259_v19 = vpop.f32.mrf.mxu2  ;;  %v1021_v14 = vld [vmem:[#allocation7 + $0x178] sm:$0xff] }
 0x125   : > { %v1260_v22 = vadd.f32 %v1259_v19, %v1093_v18  ;;  %v1108_v18 = vpop.permute.xlu0 %1107 }
 0x127   : > { %v1372_v25 = vpop.f32.mrf.mxu3  ;;  %v716_v28 = vpop.f32.mrf.mxu0 }
 0x128   : > { %v1373_v29 = vadd.f32 %v1372_v25, %v1260_v22  ;;  %v717_v34 = vadd.f32 %v716_v28, %v2487_v4  ;;  %v829_v37 = vpop.f32.mrf.mxu1  ;;  %v1018_v4 = vld [vmem:[#allocation7 + $0x160] sm:$0xff] }
 0x129   : > { %1309 = vmatmul.f32.gmra.mxu2 %v1016_v60 }
 0x12a   : > { %1460 = vst [vmem:[%s2697_s6 + $0x20] sm:$0xff] %v1373_v29  ;;  %v830_v43 = vadd.f32 %v829_v37, %v717_v34  ;;  %763 = vmatmul.f32.gmra.mxu0 %v470_v32  ;;  %v476_v29 = vld [vmem:[%s2944_s2 + $0x180] sm:$0xff]  ;;  %v477_v37 = vld [vmem:[%s2944_s2 + $0x188] sm:$0xff] }
 0x12b   : > { %876 = vmatmul.f32.gmra.mxu1 %v471_v38  ;;  %v1023_v38 = vld [vmem:[#allocation7 + $0x188] sm:$0xff] }
 0x12c   : > { %1422 = vmatmul.f32.gmra.mxu3 %v1017_v42  ;;  %915 = vst [vmem:[%s2682_s14 + $0x28] sm:$0xff] %v830_v43  ;;  %v1262_v47 = vpop.f32.mrf.mxu2  ;;  %v1113_v43 = vpop.permute.xlu1 %1112 }
 0x12d   : > { %v1263_v16 = vadd.f32 %v1262_v47, %v1098_v44 }
 0x12f   : > { %v1375_v49 = vpop.f32.mrf.mxu3  ;;  %v719_v50 = vpop.f32.mrf.mxu0 }
 0x130   : > { %v1376_v52 = vadd.f32 %v1375_v49, %v1263_v16  ;;  %v720_v54 = vadd.f32 %v719_v50, %v2546_v31  ;;  %v832_v56 = vpop.f32.mrf.mxu1  ;;  %v1020_v31 = vld [vmem:[#allocation7 + $0x170] sm:$0xff] }
 0x131   : > { %1312 = vmatmul.f32.gmra.mxu2 %v1018_v4  ;;  %v478_v50 = vld [vmem:[%s2944_s2 + $0x190] sm:$0xff] }
 0x132   : > { %1461 = vst [vmem:[%s2697_s6 + $0x28] sm:$0xff] %v1376_v52  ;;  %v833_v59 = vadd.f32 %v832_v56, %v720_v54  ;;  %766 = vmatmul.f32.gmra.mxu0 %v472_v53  ;;  %v479_v54 = vld [vmem:[%s2944_s2 + $0x198] sm:$0xff] }
 0x133   : > { %879 = vmatmul.f32.gmra.mxu1 %v473_v11  ;;  %v1025_v56 = vld [vmem:[#allocation7 + $0x198] sm:$0xff] }
 0x134   : > { %1425 = vmatmul.f32.gmra.mxu3 %v1019_v58  ;;  %916 = vst [vmem:[%s2682_s14 + $0x30] sm:$0xff] %v833_v59  ;;  %v1265_v0 = vpop.f32.mrf.mxu2  ;;  %v1118_v58 = vpop.permute.xlu2 %1117 }
 0x135   : > { %v1266_v1 = vadd.f32 %v1265_v0, %v1103_v63 }
 0x137   : > { %v1378_v26 = vpop.f32.mrf.mxu3  ;;  %v722_v3 = vpop.f32.mrf.mxu0 }
 0x138   : > { %v1379_v5 = vadd.f32 %v1378_v26, %v1266_v1  ;;  %v723_v7 = vadd.f32 %v722_v3, %v2556_v36  ;;  %v835_v12 = vpop.f32.mrf.mxu1  ;;  %v1022_v36 = vld [vmem:[#allocation7 + $0x180] sm:$0xff] }
 0x139   : > { %1315 = vmatmul.f32.gmra.mxu2 %v1020_v31  ;;  %v480_v31 = vld [vmem:[%s2944_s2 + $0x1a0] sm:$0xff] }
 0x13a   : > { %1462 = vst [vmem:[%s2697_s6 + $0x30] sm:$0xff] %v1379_v5  ;;  %v836_v17 = vadd.f32 %v835_v12, %v723_v7  ;;  %769 = vmatmul.f32.gmra.mxu0 %v474_v6  ;;  %v481_v6 = vld [vmem:[%s2944_s2 + $0x1a8] sm:$0xff] }
 0x13b   : > { %882 = vmatmul.f32.gmra.mxu1 %v475_v21  ;;  %v1027_v7 = vld [vmem:[#allocation7 + $0x1a8] sm:$0xff]  ;;  %v1123_v21 = vpop.permute.xlu0 %1122 }
 0x13c   : > { %1428 = vmatmul.f32.gmra.mxu3 %v1021_v14  ;;  %917 = vst [vmem:[%s2682_s14 + $0x38] sm:$0xff] %v836_v17  ;;  %v1268_v19 = vpop.f32.mrf.mxu2 }
 0x13d   : > { %v1269_v22 = vadd.f32 %v1268_v19, %v1108_v18 }
 0x13f   : > { %v1381_v25 = vpop.f32.mrf.mxu3  ;;  %v725_v60 = vpop.f32.mrf.mxu0 }
 0x140   : > { %v1382_v28 = vadd.f32 %v1381_v25, %v1269_v22  ;;  %v726_v32 = vadd.f32 %v725_v60, %v2506_v13  ;;  %v838_v34 = vpop.f32.mrf.mxu1  ;;  %v1024_v13 = vld [vmem:[#allocation7 + $0x190] sm:$0xff] }
 0x141   : > { %1318 = vmatmul.f32.gmra.mxu2 %v1022_v36  ;;  %v482_v25 = vld [vmem:[%s2944_s2 + $0x1b0] sm:$0xff] }
 0x142   : > { %1463 = vst [vmem:[%s2697_s6 + $0x38] sm:$0xff] %v1382_v28  ;;  %v839_v42 = vadd.f32 %v838_v34, %v726_v32  ;;  %772 = vmatmul.f32.gmra.mxu0 %v476_v29  ;;  %v483_v28 = vld [vmem:[%s2944_s2 + $0x1b8] sm:$0xff]  ;;  %v1128_v34 = vpop.permute.xlu1 %1127 }
 0x143   : > { %885 = vmatmul.f32.gmra.mxu1 %v477_v37  ;;  %v1029_v29 = vld [vmem:[#allocation7 + $0x1b8] sm:$0xff] }
 0x144   : > { %1431 = vmatmul.f32.gmra.mxu3 %v1023_v38  ;;  %918 = vst [vmem:[%s2682_s14 + $0x40] sm:$0xff] %v839_v42  ;;  %v1271_v44 = vpop.f32.mrf.mxu2 }
 0x145   : > { %v1272_v47 = vadd.f32 %v1271_v44, %v1113_v43 }
 0x147   : > { %v1384_v16 = vpop.f32.mrf.mxu3  ;;  %v728_v49 = vpop.f32.mrf.mxu0 }
 0x148   : > { %v1385_v4 = vadd.f32 %v1384_v16, %v1272_v47  ;;  %v729_v52 = vadd.f32 %v728_v49, %v2567_v41  ;;  %v841_v53 = vpop.f32.mrf.mxu1  ;;  %v1026_v41 = vld [vmem:[#allocation7 + $0x1a0] sm:$0xff]  ;;  %v485_v49 = vld [vmem:[%s2944_s2 + $0x1c8] sm:$0xff] }
 0x149   : > { %1321 = vmatmul.f32.gmra.mxu2 %v1024_v13  ;;  %v484_v47 = vld [vmem:[%s2944_s2 + $0x1c0] sm:$0xff] }
 0x14a   : > { %1464 = vst [vmem:[%s2697_s6 + $0x40] sm:$0xff] %v1385_v4  ;;  %v842_v11 = vadd.f32 %v841_v53, %v729_v52  ;;  %775 = vmatmul.f32.gmra.mxu0 %v478_v50  ;;  %v1031_v4 = vld [vmem:[#allocation7 + $0x1c8] sm:$0xff]  ;;  %v1133_v52 = vpop.permute.xlu2 %1132 }
 0x14b   : > { %888 = vmatmul.f32.gmra.mxu1 %v479_v54 }
 0x14c   : > { %1434 = vmatmul.f32.gmra.mxu3 %v1025_v56  ;;  %919 = vst [vmem:[%s2682_s14 + $0x48] sm:$0xff] %v842_v11  ;;  %v1274_v59 = vpop.f32.mrf.mxu2 }
 0x14d   : > { %v1275_v63 = vadd.f32 %v1274_v59, %v1118_v58  ;;  %v486_v59 = vld [vmem:[%s2944_s2 + $0x1d0] sm:$0xff] }
 0x14f   : > { %v1387_v0 = vpop.f32.mrf.mxu3  ;;  %v731_v1 = vpop.f32.mrf.mxu0 }
 0x150   : > { %v1388_v26 = vadd.f32 %v1387_v0, %v1275_v63  ;;  %v732_v3 = vadd.f32 %v731_v1, %v2575_v45  ;;  %v844_v5 = vpop.f32.mrf.mxu1  ;;  %v1028_v45 = vld [vmem:[#allocation7 + $0x1b0] sm:$0xff]  ;;  %v1033_v1 = vld [vmem:[#allocation7 + $0x1d8] sm:$0xff] }
 0x151   : > { %1324 = vmatmul.f32.gmra.mxu2 %v1026_v41  ;;  %v487_v41 = vld [vmem:[%s2944_s2 + $0x1d8] sm:$0xff] }
 0x152   : > { %1465 = vst [vmem:[%s2697_s6 + $0x48] sm:$0xff] %v1388_v26  ;;  %v845_v12 = vadd.f32 %v844_v5, %v732_v3  ;;  %778 = vmatmul.f32.gmra.mxu0 %v480_v31  ;;  %v1138_v31 = vpop.permute.xlu0 %1137 }
 0x153   : > { %891 = vmatmul.f32.gmra.mxu1 %v481_v6 }
 0x154   : > { %1437 = vmatmul.f32.gmra.mxu3 %v1027_v7  ;;  %920 = vst [vmem:[%s2682_s14 + $0x50] sm:$0xff] %v845_v12  ;;  %v1277_v14 = vpop.f32.mrf.mxu2 }
 0x155   : > { %v1278_v17 = vadd.f32 %v1277_v14, %v1123_v21  ;;  %v488_v21 = vld [vmem:[%s2944_s2 + $0x1e0] sm:$0xff] }
 0x157   : > { %v1390_v18 = vpop.f32.mrf.mxu3  ;;  %v734_v19 = vpop.f32.mrf.mxu0 }
 0x158   : > { %v1391_v22 = vadd.f32 %v1390_v18, %v1278_v17  ;;  %v735_v36 = vadd.f32 %v734_v19, %v2527_v23  ;;  %v847_v60 = vpop.f32.mrf.mxu1  ;;  %v1030_v23 = vld [vmem:[#allocation7 + $0x1c0] sm:$0xff]  ;;  %v489_v18 = vld [vmem:[%s2944_s2 + $0x1e8] sm:$0xff] }
 0x159   : > { %1327 = vmatmul.f32.gmra.mxu2 %v1028_v45  ;;  %v1035_v45 = vld [vmem:[#allocation7 + $0x1e8] sm:$0xff] }
 0x15a   : > { %1466 = vst [vmem:[%s2697_s6 + $0x50] sm:$0xff] %v1391_v22  ;;  %v848_v32 = vadd.f32 %v847_v60, %v735_v36  ;;  %781 = vmatmul.f32.gmra.mxu0 %v482_v25  ;;  %v1143_v22 = vpop.permute.xlu1 %1142 }
 0x15b   : > { %894 = vmatmul.f32.gmra.mxu1 %v483_v28 }
 0x15c   : > { %1440 = vmatmul.f32.gmra.mxu3 %v1029_v29  ;;  %921 = vst [vmem:[%s2682_s14 + $0x58] sm:$0xff] %v848_v32  ;;  %v1280_v37 = vpop.f32.mrf.mxu2  ;;  %v490_v32 = vld [vmem:[%s2944_s2 + $0x1f0] sm:$0xff] }
 0x15d   : > { %v1281_v38 = vadd.f32 %v1280_v37, %v1128_v34 }
 0x15f   : > { %v1393_v42 = vpop.f32.mrf.mxu3  ;;  %v737_v43 = vpop.f32.mrf.mxu0 }
 0x160   : > { %v1394_v44 = vadd.f32 %v1393_v42, %v1281_v38  ;;  %v738_v16 = vadd.f32 %v737_v43, %v2588_v51  ;;  %v850_v13 = vpop.f32.mrf.mxu1  ;;  %v1032_v51 = vld [vmem:[#allocation7 + $0x1d0] sm:$0xff]  ;;  %v491_v38 = vld [vmem:[%s2944_s2 + $0x1f8] sm:$0xff]  ;;  %v1148_v43 = vpop.permute.xlu2 %1147 }
 0x161   : > { %1330 = vmatmul.f32.gmra.mxu2 %v1030_v23  ;;  %v1037_v42 = vld [vmem:[#allocation7 + $0x1f8] sm:$0xff] }
 0x162   : > { %1467 = vst [vmem:[%s2697_s6 + $0x58] sm:$0xff] %v1394_v44  ;;  %v851_v50 = vadd.f32 %v850_v13, %v738_v16  ;;  %784 = vmatmul.f32.gmra.mxu0 %v484_v47 }
 0x163   : > { %897 = vmatmul.f32.gmra.mxu1 %v485_v49 }
 0x164   : > { %1443 = vmatmul.f32.gmra.mxu3 %v1031_v4  ;;  %922 = vst [vmem:[%s2682_s14 + $0x60] sm:$0xff] %v851_v50  ;;  %v1283_v53 = vpop.f32.mrf.mxu2 }
 0x165   : > { %v1284_v54 = vadd.f32 %v1283_v53, %v1133_v52  ;;  %v1153_v52 = vpop.permute.xlu0 %1152 }
 0x167   : > { %v1396_v56 = vpop.f32.mrf.mxu3  ;;  %v740_v11 = vpop.f32.mrf.mxu0 }
 0x168   : > { %v1397_v58 = vadd.f32 %v1396_v56, %v1284_v54  ;;  %v741_v63 = vadd.f32 %v740_v11, %v2596_v55  ;;  %v853_v0 = vpop.f32.mrf.mxu1  ;;  %v1034_v55 = vld [vmem:[#allocation7 + $0x1e0] sm:$0xff] }
 0x169   : > { %1333 = vmatmul.f32.gmra.mxu2 %v1032_v51 }
 0x16a   : > { %1468 = vst [vmem:[%s2697_s6 + $0x60] sm:$0xff] %v1397_v58  ;;  %v854_v26 = vadd.f32 %v853_v0, %v741_v63  ;;  %787 = vmatmul.f32.gmra.mxu0 %v486_v59  ;;  %v1158_v0 = vpop.permute.xlu1 %1157 }
 0x16b   : > { %900 = vmatmul.f32.gmra.mxu1 %v487_v41 }
 0x16c   : > { %1446 = vmatmul.f32.gmra.mxu3 %v1033_v1  ;;  %923 = vst [vmem:[%s2682_s14 + $0x68] sm:$0xff] %v854_v26  ;;  %v1286_v3 = vpop.f32.mrf.mxu2 }
 0x16d   : > { %v1287_v5 = vadd.f32 %v1286_v3, %v1138_v31 }
 0x16f   : > { %v1399_v6 = vpop.f32.mrf.mxu3  ;;  %v743_v7 = vpop.f32.mrf.mxu0 }
 0x170   : > { %v1400_v12 = vadd.f32 %v1399_v6, %v1287_v5  ;;  %v744_v14 = vadd.f32 %v743_v7, %v2548_v33  ;;  %v856_v17 = vpop.f32.mrf.mxu1  ;;  %v1036_v33 = vld [vmem:[#allocation7 + $0x1f0] sm:$0xff] }
 0x171   : > { %1336 = vmatmul.f32.gmra.mxu2 %v1034_v55  ;;  %v1163_v55 = vpop.permute.xlu2 %1162 }
 0x172   : > { %1469 = vst [vmem:[%s2697_s6 + $0x68] sm:$0xff] %v1400_v12  ;;  %v857_v19 = vadd.f32 %v856_v17, %v744_v14  ;;  %790 = vmatmul.f32.gmra.mxu0 %v488_v21 }
 0x173   : > { %903 = vmatmul.f32.gmra.mxu1 %v489_v18 }
 0x174   : > { %1449 = vmatmul.f32.gmra.mxu3 %v1035_v45  ;;  %924 = vst [vmem:[%s2682_s14 + $0x70] sm:$0xff] %v857_v19  ;;  %v1289_v25 = vpop.f32.mrf.mxu2  ;;  %v1168_v19 = vpop.permute.xlu0 %1167 }
 0x175   : > { %v1290_v36 = vadd.f32 %v1289_v25, %v1143_v22 }
 0x177   : > { %v1402_v60 = vpop.f32.mrf.mxu3  ;;  %v746_v28 = vpop.f32.mrf.mxu0 }
 0x178   : > { %v1403_v29 = vadd.f32 %v1402_v60, %v1290_v36  ;;  %v747_v34 = vadd.f32 %v746_v28, %v2609_v62  ;;  %v859_v37 = vpop.f32.mrf.mxu1 }
 0x179   : > { %1339 = vmatmul.f32.gmra.mxu2 %v1036_v33 }
 0x17a   : > { %1470 = vst [vmem:[%s2697_s6 + $0x70] sm:$0xff] %v1403_v29  ;;  %v860_v23 = vadd.f32 %v859_v37, %v747_v34  ;;  %793 = vmatmul.f32.gmra.mxu0 %v490_v32  ;;  %v1173_v32 = vpop.permute.xlu1 %1172 }
 0x17b   : > { %906 = vmatmul.f32.gmra.mxu1 %v491_v38 }
 0x17c   : > { %1452 = vmatmul.f32.gmra.mxu3 %v1037_v42  ;;  %925 = vst [vmem:[%s2682_s14 + $0x78] sm:$0xff] %v860_v23  ;;  %v1292_v44 = vpop.f32.mrf.mxu2 }
 0x17d   : > { %v1293_v47 = vadd.f32 %v1292_v44, %v1148_v43 }
 0x17f   : > { %v1405_v16 = vpop.f32.mrf.mxu3  ;;  %v749_v62 = vpop.f32.mrf.mxu0 }
 0x180   : > { %v1406_v13 = vadd.f32 %v1405_v16, %v1293_v47  ;;  %v750_v49 = vadd.f32 %v749_v62, %v2617_v2  ;;  %v862_v4 = vpop.f32.mrf.mxu1  ;;  %v1178_v47 = vpop.permute.xlu2 %1177 }
 0x182   : > { %1471 = vst [vmem:[%s2697_s6 + $0x78] sm:$0xff] %v1406_v13  ;;  %v863_v50 = vadd.f32 %v862_v4, %v750_v49 }
 0x184   : > { %926 = vst [vmem:[%s2682_s14 + $0x80] sm:$0xff] %v863_v50  ;;  %v1295_v53 = vpop.f32.mrf.mxu2 }
 0x185   : > { %v1296_v54 = vadd.f32 %v1295_v53, %v1153_v52  ;;  %v1183_v53 = vpop.permute.xlu0 %1182 }
 0x187   : > { %v1408_v56 = vpop.f32.mrf.mxu3  ;;  %v752_v51 = vpop.f32.mrf.mxu0 }
 0x188   : > { %v1409_v11 = vadd.f32 %v1408_v56, %v1296_v54  ;;  %v753_v58 = vadd.f32 %v752_v51, %v2580_v48  ;;  %v865_v59 = vpop.f32.mrf.mxu1 }
 0x18a   : > { %1472 = vst [vmem:[%s2697_s6 + $0x80] sm:$0xff] %v1409_v11  ;;  %v866_v63 = vadd.f32 %v865_v59, %v753_v58 }
 0x18c   : > { %927 = vst [vmem:[%s2682_s14 + $0x88] sm:$0xff] %v866_v63  ;;  %v1298_v2 = vpop.f32.mrf.mxu2 }
 0x18d   : > { %v1299_v41 = vadd.f32 %v1298_v2, %v1158_v0  ;;  %v1188_v0 = vpop.permute.xlu1 %1187 }
 0x18f   : > { %v1411_v1 = vpop.f32.mrf.mxu3  ;;  %v755_v26 = vpop.f32.mrf.mxu0 }
 0x190   : > { %v1412_v31 = vadd.f32 %v1411_v1, %v1299_v41  ;;  %v756_v3 = vadd.f32 %v755_v26, %v2628_v8  ;;  %v868_v5 = vpop.f32.mrf.mxu1 }
 0x192   : > { %1473 = vst [vmem:[%s2697_s6 + $0x88] sm:$0xff] %v1412_v31  ;;  %v869_v6 = vadd.f32 %v868_v5, %v756_v3 }
 0x194   : > { %928 = vst [vmem:[%s2682_s14 + $0x90] sm:$0xff] %v869_v6  ;;  %v1301_v48 = vpop.f32.mrf.mxu2  ;;  %v1193_v6 = vpop.permute.xlu2 %1192 }
 0x195   : > { %v1302_v7 = vadd.f32 %v1301_v48, %v1163_v55 }
 0x197   : > { %v1414_v12 = vpop.f32.mrf.mxu3  ;;  %v758_v21 = vpop.f32.mrf.mxu0 }
 0x198   : > { %v1415_v14 = vadd.f32 %v1414_v12, %v1302_v7  ;;  %v759_v17 = vadd.f32 %v758_v21, %v2638_v15  ;;  %v871_v18 = vpop.f32.mrf.mxu1 }
 0x19a   : > { %1474 = vst [vmem:[%s2697_s6 + $0x90] sm:$0xff] %v1415_v14  ;;  %v872_v45 = vadd.f32 %v871_v18, %v759_v17  ;;  %v1198_v18 = vpop.permute.xlu0 %1197 }
 0x19c   : > { %929 = vst [vmem:[%s2682_s14 + $0x98] sm:$0xff] %v872_v45  ;;  %v1304_v8 = vpop.f32.mrf.mxu2 }
 0x19d   : > { %v1305_v22 = vadd.f32 %v1304_v8, %v1168_v19 }
 0x19f   : > { %v1417_v25 = vpop.f32.mrf.mxu3  ;;  %v761_v36 = vpop.f32.mrf.mxu0 }
 0x1a0   : > { %v1418_v60 = vadd.f32 %v1417_v25, %v1305_v22  ;;  %v762_v33 = vadd.f32 %v761_v36, %v2607_v61  ;;  %v874_v28 = vpop.f32.mrf.mxu1 }
 0x1a2   : > { %1475 = vst [vmem:[%s2697_s6 + $0x98] sm:$0xff] %v1418_v60  ;;  %v875_v29 = vadd.f32 %v874_v28, %v762_v33  ;;  %v1203_v33 = vpop.permute.xlu1 %1202 }
 0x1a4   : > { %930 = vst [vmem:[%s2682_s14 + $0xa0] sm:$0xff] %v875_v29  ;;  %v1307_v15 = vpop.f32.mrf.mxu2 }
 0x1a5   : > { %v1308_v34 = vadd.f32 %v1307_v15, %v1173_v32 }
 0x1a7   : > { %v1420_v37 = vpop.f32.mrf.mxu3  ;;  %v764_v38 = vpop.f32.mrf.mxu0 }
 0x1a8   : > { %v1421_v42 = vadd.f32 %v1420_v37, %v1308_v34  ;;  %v765_v23 = vadd.f32 %v764_v38, %v2646_v20  ;;  %v877_v43 = vpop.f32.mrf.mxu1 }
 0x1aa   : > { %1476 = vst [vmem:[%s2697_s6 + $0xa0] sm:$0xff] %v1421_v42  ;;  %v878_v44 = vadd.f32 %v877_v43, %v765_v23  ;;  %v1208_v42 = vpop.permute.xlu2 %1207 }
 0x1ac   : > { %931 = vst [vmem:[%s2682_s14 + $0xa8] sm:$0xff] %v878_v44  ;;  %v1310_v61 = vpop.f32.mrf.mxu2 }
 0x1ad   : > { %v1311_v16 = vadd.f32 %v1310_v61, %v1178_v47 }
 0x1af   : > { %v1423_v62 = vpop.f32.mrf.mxu3  ;;  %v767_v13 = vpop.f32.mrf.mxu0 }
 0x1b0   : > { %v1424_v49 = vadd.f32 %v1423_v62, %v1311_v16  ;;  %v768_v4 = vadd.f32 %v767_v13, %v2653_v27  ;;  %v880_v50 = vpop.f32.mrf.mxu1 }
 0x1b2   : > { %1477 = vst [vmem:[%s2697_s6 + $0xa8] sm:$0xff] %v1424_v49  ;;  %v881_v52 = vadd.f32 %v880_v50, %v768_v4 }
 0x1b4   : > { %932 = vst [vmem:[%s2682_s14 + $0xb0] sm:$0xff] %v881_v52  ;;  %v1313_v20 = vpop.f32.mrf.mxu2 }
 0x1b5   : > { %v1314_v54 = vadd.f32 %v1313_v20, %v1183_v53 }
 0x1b7   : > { %v1426_v56 = vpop.f32.mrf.mxu3  ;;  %v770_v51 = vpop.f32.mrf.mxu0 }
 0x1b8   : > { %v1427_v11 = vadd.f32 %v1426_v56, %v1314_v54  ;;  %v771_v58 = vadd.f32 %v770_v51, %v2630_v9  ;;  %v883_v59 = vpop.f32.mrf.mxu1 }
 0x1ba   : > { %1478 = vst [vmem:[%s2697_s6 + $0xb0] sm:$0xff] %v1427_v11  ;;  %v884_v63 = vadd.f32 %v883_v59, %v771_v58 }
 0x1bc   : > { %933 = vst [vmem:[%s2682_s14 + $0xb8] sm:$0xff] %v884_v63  ;;  %v1316_v27 = vpop.f32.mrf.mxu2 }
 0x1bd   : > { %v1317_v2 = vadd.f32 %v1316_v27, %v1188_v0  ;;  %v1223_v27 = vpop.permute.xlu2 %1222 }
 0x1bf   : > { %v1429_v41 = vpop.f32.mrf.mxu3  ;;  %v773_v1 = vpop.f32.mrf.mxu0 }
 0x1c0   : > { %v1430_v26 = vadd.f32 %v1429_v41, %v1317_v2  ;;  %v774_v31 = vadd.f32 %v773_v1, %v2658_v30  ;;  %v886_v3 = vpop.f32.mrf.mxu1 }
 0x1c2   : > { %1479 = vst [vmem:[%s2697_s6 + $0xb8] sm:$0xff] %v1430_v26  ;;  %v887_v5 = vadd.f32 %v886_v3, %v774_v31 }
 0x1c4   : > { %934 = vst [vmem:[%s2682_s14 + $0xc0] sm:$0xff] %v887_v5  ;;  %v1319_v9 = vpop.f32.mrf.mxu2 }
 0x1c5   : > { %v1320_v55 = vadd.f32 %v1319_v9, %v1193_v6 }
 0x1c7   : > { %v1432_v48 = vpop.f32.mrf.mxu3  ;;  %v776_v7 = vpop.f32.mrf.mxu0 }
 0x1c8   : > { %v1433_v12 = vadd.f32 %v1432_v48, %v1320_v55  ;;  %v777_v21 = vadd.f32 %v776_v7, %v2663_v35  ;;  %v889_v14 = vpop.f32.mrf.mxu1 }
 0x1ca   : > { %1480 = vst [vmem:[%s2697_s6 + $0xc0] sm:$0xff] %v1433_v12  ;;  %v890_v17 = vadd.f32 %v889_v14, %v777_v21 }
 0x1cc   : > { %935 = vst [vmem:[%s2682_s14 + $0xc8] sm:$0xff] %v890_v17  ;;  %v1322_v30 = vpop.f32.mrf.mxu2 }
 0x1cd   : > { %v1323_v45 = vadd.f32 %v1322_v30, %v1198_v18 }
 0x1cf   : > { %v1435_v19 = vpop.f32.mrf.mxu3  ;;  %v779_v8 = vpop.f32.mrf.mxu0 }
 0x1d0   : > { %v1436_v22 = vadd.f32 %v1435_v19, %v1323_v45  ;;  %v780_v25 = vadd.f32 %v779_v8, %v2648_v24  ;;  %v892_v36 = vpop.f32.mrf.mxu1 }
 0x1d2   : > { %1481 = vst [vmem:[%s2697_s6 + $0xc8] sm:$0xff] %v1436_v22  ;;  %v893_v60 = vadd.f32 %v892_v36, %v780_v25 }
 0x1d4   : > { %936 = vst [vmem:[%s2682_s14 + $0xd0] sm:$0xff] %v893_v60  ;;  %v1325_v35 = vpop.f32.mrf.mxu2 }
 0x1d5   : > { %v1326_v28 = vadd.f32 %v1325_v35, %v1203_v33 }
 0x1d7   : > { %v1438_v29 = vpop.f32.mrf.mxu3  ;;  %v782_v32 = vpop.f32.mrf.mxu0 }
 0x1d8   : > { %v1439_v15 = vadd.f32 %v1438_v29, %v1326_v28  ;;  %v783_v34 = vadd.f32 %v782_v32, %v2670_v40  ;;  %v895_v37 = vpop.f32.mrf.mxu1  ;;  %v1213_v40 = vpop.permute.xlu0 %1212 }
 0x1da   : > { %1482 = vst [vmem:[%s2697_s6 + $0xd0] sm:$0xff] %v1439_v15  ;;  %v896_v38 = vadd.f32 %v895_v37, %v783_v34 }
 0x1dc   : > { %937 = vst [vmem:[%s2682_s14 + $0xd8] sm:$0xff] %v896_v38  ;;  %v1328_v24 = vpop.f32.mrf.mxu2 }
 0x1dd   : > { %v1329_v23 = vadd.f32 %v1328_v24, %v1208_v42 }
 0x1df   : > { %v1441_v43 = vpop.f32.mrf.mxu3  ;;  %v785_v44 = vpop.f32.mrf.mxu0 }
 0x1e0   : > { %v1442_v47 = vadd.f32 %v1441_v43, %v1329_v23  ;;  %v786_v61 = vadd.f32 %v785_v44, %v2675_v46  ;;  %v898_v16 = vpop.f32.mrf.mxu1  ;;  %v1218_v46 = vpop.permute.xlu1 %1217 }
 0x1e1   : > { %v1228_v6 = vpop.permute.xlu0 %1227 }
 0x1e2   : > { %1483 = vst [vmem:[%s2697_s6 + $0xd8] sm:$0xff] %v1442_v47  ;;  %v899_v62 = vadd.f32 %v898_v16, %v786_v61 }
 0x1e4   : > { %938 = vst [vmem:[%s2682_s14 + $0xe0] sm:$0xff] %v899_v62  ;;  %v1331_v13 = vpop.f32.mrf.mxu2 }
 0x1e5   : > { %v1332_v49 = vadd.f32 %v1331_v13, %v1213_v40 }
 0x1e7   : > { %v1444_v4 = vpop.f32.mrf.mxu3  ;;  %v788_v50 = vpop.f32.mrf.mxu0 }
 0x1e8   : > { %v1445_v52 = vadd.f32 %v1444_v4, %v1332_v49  ;;  %v789_v53 = vadd.f32 %v788_v50, %v2668_v39  ;;  %v901_v20 = vpop.f32.mrf.mxu1 }
 0x1ea   : > { %1484 = vst [vmem:[%s2697_s6 + $0xe0] sm:$0xff] %v1445_v52  ;;  %v902_v54 = vadd.f32 %v901_v20, %v789_v53 }
 0x1ec   : > { %939 = vst [vmem:[%s2682_s14 + $0xe8] sm:$0xff] %v902_v54  ;;  %v1334_v56 = vpop.f32.mrf.mxu2 }
 0x1ed   : > { %v1335_v51 = vadd.f32 %v1334_v56, %v1218_v46 }
 0x1ef   : > { %v1447_v11 = vpop.f32.mrf.mxu3  ;;  %v791_v58 = vpop.f32.mrf.mxu0 }
 0x1f0   : > { %v1448_v59 = vadd.f32 %v1447_v11, %v1335_v51  ;;  %v792_v63 = vadd.f32 %v791_v58, %v2685_v57  ;;  %v904_v0 = vpop.f32.mrf.mxu1 }
 0x1f2   : > { %1485 = vst [vmem:[%s2697_s6 + $0xe8] sm:$0xff] %v1448_v59  ;;  %v905_v39 = vadd.f32 %v904_v0, %v792_v63 }
 0x1f4   : > { %940 = vst [vmem:[%s2682_s14 + $0xf0] sm:$0xff] %v905_v39  ;;  %v1337_v2 = vpop.f32.mrf.mxu2 }
 0x1f5   : > { %v1338_v41 = vadd.f32 %v1337_v2, %v1223_v27 }
 0x1f7   : > { %v1450_v1 = vpop.f32.mrf.mxu3  ;;  %v794_v57 = vpop.f32.mrf.mxu0 }
 0x1f8   : > { %v1451_v26 = vadd.f32 %v1450_v1, %v1338_v41  ;;  %v795_v31 = vadd.f32 %v794_v57, %v2694_v10  ;;  %v907_v3 = vpop.f32.mrf.mxu1 }
 0x1fa   : > { %1486 = vst [vmem:[%s2697_s6 + $0xf0] sm:$0xff] %v1451_v26  ;;  %v908_v5 = vadd.f32 %v907_v3, %v795_v31 }
 0x1fc   : > { %941 = vst [vmem:[%s2682_s14 + $0xf8] sm:$0xff] %v908_v5  ;;  %v1340_v9 = vpop.f32.mrf.mxu2 }
 0x1fd   : > { %v1341_v55 = vadd.f32 %v1340_v9, %v1228_v6 }
 0x1fe   : > { %1943 = shalt.err (!%p1940_p13)
}
 0x1ff   : > { %s2060_s14 = smov 128   ;;  %s2061_s28 = smov 256   ;;  %v1453_v10 = vpop.f32.mrf.mxu3 }
 0x200   : > { %s2062_s10 = smov 8   ;;  %v1454_v48 = vadd.f32 %v1453_v10, %v1341_v55  ;;  %s1494_s23 = scalar_lea.sflag [#allocation10], %s2237_s7 }
 0x201   : > { %1726 = dma.vmem_to_hbm [thread:$0]  (%p2190_p3), %s2884_s27, 4096, %s1510_s21, %s1489_s30, %s2060_s14, %s2061_s28, %s2062_s10  }
 0x202   : > { %1487 = vst [vmem:[%s2697_s6 + $0xf8] sm:$0xff] %v1454_v48  ;;  %s1958_s4 = sshra.s32 %s1528_s22, 4  ;;  %s1964_s11 = scalar_lea.hbm %s2986_s17, 1024  ;;  %s1959_s4 = int_to_ptr.hbm [resolvable:$true] %s1958_s4 }
 0x203   : > { %s1960_s13 = scalar_lea.hbm %s1959_s4, 256  ;;  %p1965_p9 = scmp.lt.s32.totalorder %s1959_s4, %s2986_s17 }
 0x204   : > { %p1961_p0 = scmp.ne.s32.totalorder %s1959_s4, %s1960_s13  ;;  %p1966_p2 = scmp.lt.s32.totalorder %s1964_s11, %s1960_s13 }
 0x206   : > { %p1962_p5 = pnand %p1961_p0, %p2190_p3  ;;  %p1967_p1 = por %p1966_p2, %p1965_p9 }
 0x208   : > { %p1963_p7 = pneg %p1962_p5 }
 0x20a   : > { %p1968_p4 = pnand %p1967_p1, %p1963_p7 }
 0x20c   : > { %1971 = shalt.err (!%p1968_p4)
}
 0x20d   : > { %1727 = dma.vmem_to_hbm [thread:$0]  (%p2190_p3), %s1526_s29, 4096, %s1528_s22, %s1494_s23, %s2060_s14, %s2061_s28, %s2062_s10  }
 0x20e PF: > { %s2988_s7 = sld [smem:[#allocation16_spill]]  ;;  %p1751_p8 = scmp.ge.s32.totalorder %s2054_s8, 2 }
 0x210   : > { %p1742_p10 = pnand %p1751_p8, %p2158_p6 }
 0x212   : > { %p1743_p11 = pneg %p1742_p10 }
 0x214   : > { %s1542_s27 = sand.u32 1, %s2988_s7  }
 0x215   : > { %s1543_s21 = scalar_lea.sflag [#allocation4], %s1542_s27 }
 0x216   : > { %2017 = dma.done.wait (%p1743_p11), %s1543_s21, 4096  }
 0x217   : > { %2019 = vsyncadd (%p1743_p11), %s1543_s21, 4294963200  ;;  %s1553_s30 = scalar_lea.sflag [#allocation10], %s1542_s27 }
 0x218   : > { %2021 = dma.done.wait (%p1743_p11), %s1553_s30, 4096  }
 0x219   : > { %2023 = vsyncadd (%p1743_p11), %s1553_s30, 4294963200  ;;  %s30_s8 = sadd.s32 1, %s2054_s8   ;;  %s2990_s18 = sld [smem:[#allocation23_spill]] }
 0x21a   : > { %p27_p12 = scmp.ge.s32.totalorder %s30_s8, 6   ;;  %s2991_s27 = sld [smem:[#allocation17_spill]] }
 0x21b   : > { %s2992_s28 = sld [smem:[#allocation18_spill]]  ;;  %s2995_s24 = smov %s2030_s25 }
 0x21c   : > { %s2993_s29 = sld [smem:[#allocation20_spill]]  ;;  %s2996_s25 = smov %s2034_s26 }
 0x21d   : > { %s2994_s30 = sld [smem:[#allocation22_spill]]  ;;  %29 = sbr.rel (!%p27_p12) target bundleno = 15 (0xf), region = 123 }
 0x21f   : > { %s2997_s26 = smov %s2990_s18 }
 0x222   :  { %1559 = vsyncpa [#allocation3], 1 }
 0x223   :  { %1561 = vsyncpa [#allocation3 + $0x1], 1 }
 0x224   :  { %1562 = vsyncpa [#allocation6], 1 }
 0x225   :  { %1564 = vsyncpa [#allocation6 + $0x1], 1 }
 0x226   :  { %1565 = vsyncpa [#allocation4], 1 }
 0x227   :  { %1567 = vsyncpa [#allocation4 + $0x1], 1 }
 0x228   :  { %1568 = vsyncpa [#allocation10], 1 }
 0x229   :  { %1570 = vsyncpa [#allocation10 + $0x1], 1 }

</bundles_post_ra>
